<compile_context>
chip_gen: v7x
topology: tpu7x:2x2x1
jax: 0.10.0
libtpu: 0.0.40
codegen_flags: <defaults>
</compile_context>

<pallas_src>
import functools
import math

import jax
import jax.numpy as jnp
from jax.experimental import pallas as pl
from jax.experimental.pallas import tpu as pltpu

# ---- small synthetic BERT config (stand-in for bert-base-uncased) ----
VOCAB = 256
V_TILE = 128                  # vocab tile for the decoder/loss kernel (lane-dense)
HIDDEN = 32
N_LAYERS = 2
N_HEADS = 2
HEAD_DIM = HIDDEN // N_HEADS
INTER = 64
MAX_POS = 64
LN_EPS = 1e-12

MASK_VALUE = 100              # BertBase.mask_value
IGNORED_TOKEN = -103          # BertBase.ignored_token_value (ignored in MLM loss)


def _gelu(x):
    # TODO(synk): HF BERT uses the exact erf-based GELU; tanh approximation used here.
    return 0.5 * x * (1.0 + jnp.tanh(0.7978845608028654 * (x + 0.044715 * x * x * x)))


def _ln(x, g, b):
    mu = jnp.mean(x, axis=-1, keepdims=True)
    var = jnp.mean(jnp.square(x - mu), axis=-1, keepdims=True)
    return (x - mu) * jax.lax.rsqrt(var + LN_EPS) * g + b


def _bf16(x):
    return x.astype(jnp.bfloat16)


# ------------------- kernel 1: transformer layer stack -------------------

def _bert_layers_kernel(
    emb_hbm_ref,                                     # HBM (pl.ANY): (N, H) f32 embeddings
    bias_ref,                                        # (B, 1, S) f32 additive attention bias
    emb_g_ref, emb_b_ref,                            # (1, H) embedding LN params
    wqkv_ref, wo_ref, wi_ref, wf_ref,                # streamed per-layer weight matrices (bf16)
    bqkv_ref, bo_ref, ln1_g_ref, ln1_b_ref,          # resident (L, 1, K) small params
    bi_ref, bf_ref, ln2_g_ref, ln2_b_ref,
    hid_ref,                                         # output: final hidden state (N, H) f32
    h_ref, emb_sem,                                  # VMEM scratch + DMA semaphore
    *, batch, seq,
):
    layer = pl.program_id(0)

    # ---- layer 0: DMA embeddings from HBM, apply embedding LayerNorm ----
    @pl.when(layer == 0)
    def _():
        cp = pltpu.make_async_copy(emb_hbm_ref, h_ref, emb_sem)
        cp.start()
        cp.wait()
        h_ref[...] = _ln(h_ref[...], emb_g_ref[...], emb_b_ref[...])

    h = h_ref[...]                                   # (N, H) f32, resident across layers

    # ---- fused QKV projection: one bf16 MXU matmul, 3*HIDDEN-wide output ----
    qkv = (jnp.dot(_bf16(h), wqkv_ref[0], preferred_element_type=jnp.float32)
           + bqkv_ref[layer]).astype(jnp.bfloat16)   # (N, 3H) bf16

    # ---- multi-head self-attention: static loop over heads, batched over B ----
    scale = 1.0 / math.sqrt(HEAD_DIM)
    bias = bias_ref[...]                             # (B, 1, S), broadcast over queries
    ctx_heads = []
    for hh in range(N_HEADS):                        # static, small (2 toy / 12 real)
        c0 = hh * HEAD_DIM
        q = qkv[:, c0:c0 + HEAD_DIM].reshape(batch, seq, HEAD_DIM)
        k = qkv[:, HIDDEN + c0:HIDDEN + c0 + HEAD_DIM].reshape(batch, seq, HEAD_DIM)
        v = qkv[:, 2 * HIDDEN + c0:2 * HIDDEN + c0 + HEAD_DIM].reshape(batch, seq, HEAD_DIM)
        s = jnp.einsum('bqd,bkd->bqk', q, k,
                       preferred_element_type=jnp.float32) * scale + bias   # (B, S, S)
        s = s - jnp.max(s, axis=-1, keepdims=True)
        p = jnp.exp(s)
        p = p * pl.reciprocal(jnp.sum(p, axis=-1, keepdims=True), approx=True)
        o = jnp.einsum('bqk,bkd->bqd', _bf16(p), v,
                       preferred_element_type=jnp.float32)                   # (B, S, hd)
        ctx_heads.append(o.reshape(batch * seq, HEAD_DIM))
    ctx = _bf16(jnp.concatenate(ctx_heads, axis=-1))                         # (N, H) bf16

    # ---- attention output projection + residual LayerNorm ----
    attn_out = jnp.dot(ctx, wo_ref[0], preferred_element_type=jnp.float32) + bo_ref[layer]
    h1 = _ln(attn_out + h, ln1_g_ref[layer], ln1_b_ref[layer])

    # ---- FFN (up + GELU + down) + residual LayerNorm ----
    inter = _gelu(jnp.dot(_bf16(h1), wi_ref[0],
                          preferred_element_type=jnp.float32) + bi_ref[layer])
    ffn = jnp.dot(_bf16(inter), wf_ref[0],
                  preferred_element_type=jnp.float32) + bf_ref[layer]
    h_ref[...] = _ln(ffn + h1, ln2_g_ref[layer], ln2_b_ref[layer])

    # ---- write final hidden state once, on the last layer ----
    @pl.when(layer == pl.num_programs(0) - 1)
    def _():
        hid_ref[...] = h_ref[...]


# -------- kernel 2: MLM head + tied decoder + masked CE (vocab-tiled) --------

def _mlm_loss_kernel(
    h_ref,                                           # (N, H) f32 final hidden state
    labels_ref,                                      # (N, 1) int32 labels (-103 = ignored)
    mlm_w_ref, mlm_b_ref, mlm_g_ref, mlm_bb_ref,     # MLM head transform
    wemb_ref,                                        # (V_TILE, H) bf16 tied decoder tile
    dec_b_ref,                                       # (1, V_TILE) f32 decoder bias tile
    loss_ref,                                        # (1, 1) f32 output
    t_ref, m_ref, l_ref, tgt_ref,                    # VMEM scratch
    *, v_tile,
):
    v = pl.program_id(0)

    @pl.when(v == 0)
    def _():
        t = _gelu(jnp.dot(_bf16(h_ref[...]), mlm_w_ref[...],
                          preferred_element_type=jnp.float32) + mlm_b_ref[...])
        t_ref[...] = _bf16(_ln(t, mlm_g_ref[...], mlm_bb_ref[...]))   # no residual here
        m_ref[...] = jnp.full_like(m_ref, -jnp.inf)
        l_ref[...] = jnp.zeros_like(l_ref)
        tgt_ref[...] = jnp.zeros_like(tgt_ref)

    # tied decoder for this vocab tile: t @ word_emb_tile.T via dot_general
    logits = jax.lax.dot_general(
        t_ref[...], wemb_ref[...],
        dimension_numbers=(((1,), (1,)), ((), ())),
        preferred_element_type=jnp.float32) + dec_b_ref[...]          # (N, V_TILE) f32

    labels = labels_ref[...]                                          # (N, 1) int32
    col = v * v_tile + jax.lax.broadcasted_iota(jnp.int32, (1, v_tile), 1)

    # target logit gather (vectorized broadcast-compare; ignored rows never match)
    tgt_ref[...] += jnp.sum(jnp.where(col == labels, logits, 0.0),
                            axis=-1, keepdims=True)

    # online logsumexp across vocab tiles
    m_new = jnp.maximum(m_ref[...], jnp.max(logits, axis=-1, keepdims=True))
    l_ref[...] = l_ref[...] * jnp.exp(m_ref[...] - m_new) + jnp.sum(
        jnp.exp(logits - m_new), axis=-1, keepdims=True)
    m_ref[...] = m_new

    @pl.when(v == pl.num_programs(0) - 1)
    def _():
        lse = m_ref[...] + jnp.log(l_ref[...])                        # (N, 1)
        valid = (labels_ref[...] != IGNORED_TOKEN).astype(jnp.float32)
        per_row = valid * (lse - tgt_ref[...])
        n_valid = jnp.sum(valid)
        loss_ref[0, 0] = jnp.sum(per_row) / jnp.maximum(n_valid, 1.0)


# ---------------------------- parameters ----------------------------

def init_params(key):
    k = jax.random.split(key, 8)
    nrm = lambda kk, shape: 0.02 * jax.random.normal(kk, shape, jnp.float32)
    L, H, I = N_LAYERS, HIDDEN, INTER
    return dict(
        word_emb=nrm(k[0], (VOCAB, H)),                      # f32 (gather + tied decoder)
        pos_emb=nrm(k[1], (MAX_POS, H)),
        type_emb=nrm(k[2], (2, H)),
        emb_ln_g=jnp.ones((1, H), jnp.float32),
        emb_ln_b=jnp.zeros((1, H), jnp.float32),
        # big per-layer weights (streamed per layer), stored bf16
        wqkv=nrm(k[3], (L, H, 3 * H)).astype(jnp.bfloat16),  # concat of wq|wk|wv
        wo=nrm(k[4], (L, H, H)).astype(jnp.bfloat16),
        wi=nrm(k[5], (L, H, I)).astype(jnp.bfloat16),
        wf=nrm(k[6], (L, I, H)).astype(jnp.bfloat16),
        # small per-layer params (kept fully resident, indexed by layer in-kernel)
        bqkv=jnp.zeros((L, 1, 3 * H), jnp.float32),
        bo=jnp.zeros((L, 1, H), jnp.float32),
        ln1_g=jnp.ones((L, 1, H), jnp.float32),
        ln1_b=jnp.zeros((L, 1, H), jnp.float32),
        bi=jnp.zeros((L, 1, I), jnp.float32),
        bf=jnp.zeros((L, 1, H), jnp.float32),
        ln2_g=jnp.ones((L, 1, H), jnp.float32),
        ln2_b=jnp.zeros((L, 1, H), jnp.float32),
        # MLM head
        mlm_w=nrm(k[7], (H, H)).astype(jnp.bfloat16),
        mlm_b=jnp.zeros((1, H), jnp.float32),
        mlm_ln_g=jnp.ones((1, H), jnp.float32),
        mlm_ln_b=jnp.zeros((1, H), jnp.float32),
        dec_b=jnp.zeros((1, VOCAB), jnp.float32),
    )


# ---------------------------- forward (BertBase.forward) ----------------------------

def bert_base_forward(params, data, mask_labels):
    B, S = data.shape
    N = B * S
    H, I, L = HIDDEN, INTER, N_LAYERS
    mask_labels = mask_labels.astype(bool)

    # BertBase.forward preamble:
    #   data_bert[mask_labels] = 100 ; label_bert[~mask_labels] = -103
    #   attention_mask = data_bert != 0
    data_bert = jnp.where(mask_labels, MASK_VALUE, data).astype(jnp.int32)
    label_bert = jnp.where(mask_labels, data, IGNORED_TOKEN).reshape(N, 1).astype(jnp.int32)
    attn_bias = ((1.0 - (data_bert != 0).astype(jnp.float32)) * -10000.0).reshape(B, 1, S)

    # embeddings: row gather (no one-hot matmul); pos + type folded in here
    word = jnp.take(params["word_emb"], data_bert.reshape(N), axis=0)
    pos = jnp.tile(params["pos_emb"][:S], (B, 1))
    emb = (word + pos + params["type_emb"][0]).astype(jnp.float32)           # (N, H)

    cst2 = lambda l: (0, 0)
    cst3 = lambda l: (0, 0, 0)
    lyr3 = lambda l: (l, 0, 0)

    # ---- kernel 1: transformer layers, hidden state resident in VMEM ----
    # TODO(synk): at real BERT sizes add a leading token-tile grid axis marked
    # "parallel" (multiples of full sequences) so v7x's 2 TensorCores split the
    # work, and raise vmem_limit_bytes in CompilerParams for >=512-row tiles.
    hidden = pl.pallas_call(
        functools.partial(_bert_layers_kernel, batch=B, seq=S),
        out_shape=jax.ShapeDtypeStruct((N, H), jnp.float32),
        grid_spec=pltpu.PrefetchScalarGridSpec(
            num_scalar_prefetch=0,
            grid=(L,),
            in_specs=[
                pl.BlockSpec(memory_space=pl.ANY),             # emb (HBM, DMA'd on layer 0)
                pl.BlockSpec((B, 1, S), cst3),                 # additive attention bias
                pl.BlockSpec((1, H), cst2),                    # emb LN gamma
                pl.BlockSpec((1, H), cst2),                    # emb LN beta
                pl.BlockSpec((1, H, 3 * H), lyr3),             # wqkv (per-layer stream)
                pl.BlockSpec((1, H, H), lyr3),                 # wo
                pl.BlockSpec((1, H, I), lyr3),                 # wi
                pl.BlockSpec((1, I, H), lyr3),                 # wf
                pl.BlockSpec((L, 1, 3 * H), cst3),             # bqkv   (resident, tiny)
                pl.BlockSpec((L, 1, H), cst3),                 # bo
                pl.BlockSpec((L, 1, H), cst3),                 # ln1 gamma
                pl.BlockSpec((L, 1, H), cst3),                 # ln1 beta
                pl.BlockSpec((L, 1, I), cst3),                 # bi
                pl.BlockSpec((L, 1, H), cst3),                 # bf
                pl.BlockSpec((L, 1, H), cst3),                 # ln2 gamma
                pl.BlockSpec((L, 1, H), cst3),                 # ln2 beta
            ],
            out_specs=pl.BlockSpec((N, H), cst2),
            scratch_shapes=[
                pltpu.VMEM((N, H), jnp.float32),               # resident hidden state
                pltpu.SemaphoreType.DMA(()),                   # embedding DMA semaphore
            ],
        ),
        compiler_params=pltpu.CompilerParams(dimension_semantics=("arbitrary",)),
    )(emb, attn_bias, params["emb_ln_g"], params["emb_ln_b"],
      params["wqkv"], params["wo"], params["wi"], params["wf"],
      params["bqkv"], params["bo"], params["ln1_g"], params["ln1_b"],
      params["bi"], params["bf"], params["ln2_g"], params["ln2_b"])

    # ---- kernel 2: MLM head + tied decoder + masked CE, vocab-tiled online LSE ----
    wemb_bf = params["word_emb"].astype(jnp.bfloat16)          # tied decoder weight (bf16)
    cstv = lambda v: (0, 0)
    loss = pl.pallas_call(
        functools.partial(_mlm_loss_kernel, v_tile=V_TILE),
        out_shape=jax.ShapeDtypeStruct((1, 1), jnp.float32),
        grid_spec=pltpu.PrefetchScalarGridSpec(
            num_scalar_prefetch=0,
            grid=(VOCAB // V_TILE,),
            in_specs=[
                pl.BlockSpec((N, H), cstv),                    # final hidden state
                pl.BlockSpec((N, 1), cstv),                    # labels
                pl.BlockSpec((H, H), cstv),                    # mlm_w
                pl.BlockSpec((1, H), cstv),                    # mlm_b
                pl.BlockSpec((1, H), cstv),                    # mlm LN gamma
                pl.BlockSpec((1, H), cstv),                    # mlm LN beta
                pl.BlockSpec((V_TILE, H), lambda v: (v, 0)),   # word_emb tile (streamed)
                pl.BlockSpec((1, V_TILE), lambda v: (0, v)),   # decoder bias tile
            ],
            out_specs=pl.BlockSpec((1, 1), cstv),
            scratch_shapes=[
                pltpu.VMEM((N, H), jnp.bfloat16),              # MLM-transformed hidden (t)
                pltpu.VMEM((N, 1), jnp.float32),               # running max (m)
                pltpu.VMEM((N, 1), jnp.float32),               # running sumexp (l)
                pltpu.VMEM((N, 1), jnp.float32),               # target logit accumulator
            ],
        ),
        compiler_params=pltpu.CompilerParams(dimension_semantics=("arbitrary",)),
    )(hidden, label_bert, params["mlm_w"], params["mlm_b"],
      params["mlm_ln_g"], params["mlm_ln_b"], wemb_bf, params["dec_b"])

    return loss[0, 0]


if __name__ == "__main__":
    key = jax.random.PRNGKey(0)
    kp, kd, km = jax.random.split(key, 3)
    params = init_params(kp)

    B, S = 2, 8
    data = jax.random.randint(kd, (B, S), 0, VOCAB, dtype=jnp.int32)
    mask_labels = jax.random.bernoulli(km, 0.15, (B, S)).astype(jnp.int32)

    loss = bert_base_forward(params, data, mask_labels)
    loss = jax.block_until_ready(loss)
    assert loss.shape == () and jnp.isfinite(loss)
    print("KERNEL_OK")
</pallas_src>

<mosaic_0001>
module attributes {stable_mosaic.version = 11 : i64} {
  func.func @_bert_layers_kernel(%arg0: i32, %arg1: memref<16x32xf32, #tpu.memory_space<any>>, %arg2: memref<2x1x8xf32, #tpu.memory_space<vmem>>, %arg3: memref<1x32xf32, #tpu.memory_space<vmem>>, %arg4: memref<1x32xf32, #tpu.memory_space<vmem>>, %arg5: memref<1x32x96xbf16, #tpu.memory_space<vmem>>, %arg6: memref<1x32x32xbf16, #tpu.memory_space<vmem>>, %arg7: memref<1x32x64xbf16, #tpu.memory_space<vmem>>, %arg8: memref<1x64x32xbf16, #tpu.memory_space<vmem>>, %arg9: memref<2x1x96xf32, #tpu.memory_space<vmem>>, %arg10: memref<2x1x32xf32, #tpu.memory_space<vmem>>, %arg11: memref<2x1x32xf32, #tpu.memory_space<vmem>>, %arg12: memref<2x1x32xf32, #tpu.memory_space<vmem>>, %arg13: memref<2x1x64xf32, #tpu.memory_space<vmem>>, %arg14: memref<2x1x32xf32, #tpu.memory_space<vmem>>, %arg15: memref<2x1x32xf32, #tpu.memory_space<vmem>>, %arg16: memref<2x1x32xf32, #tpu.memory_space<vmem>>, %arg17: memref<16x32xf32, #tpu.memory_space<vmem>>, %arg18: memref<16x32xf32, #tpu.memory_space<vmem>>, %arg19: memref<!tpu.dma_semaphore, #tpu.memory_space<semaphore_mem>>) attributes {dimension_semantics = [#tpu.dimension_semantics<arbitrary>], iteration_bounds = array<i64: 2>, scalar_prefetch = 0 : i64, scratch_operands = 2 : i64, tpu.core_type = #tpu.core_type<tc>, window_params = [{}, {pipeline_mode = #tpu.pipeline_mode<synchronous>, transform_indices = @transform_1, window_bounds = array<i64: 2, 1, 8>}, {pipeline_mode = #tpu.pipeline_mode<synchronous>, transform_indices = @transform_2, window_bounds = array<i64: 1, 32>}, {pipeline_mode = #tpu.pipeline_mode<synchronous>, transform_indices = @transform_3, window_bounds = array<i64: 1, 32>}, {transform_indices = @transform_4, window_bounds = array<i64: 1, 32, 96>}, {transform_indices = @transform_5, window_bounds = array<i64: 1, 32, 32>}, {transform_indices = @transform_6, window_bounds = array<i64: 1, 32, 64>}, {transform_indices = @transform_7, window_bounds = array<i64: 1, 64, 32>}, {pipeline_mode = #tpu.pipeline_mode<synchronous>, transform_indices = @transform_8, window_bounds = array<i64: 2, 1, 96>}, {pipeline_mode = #tpu.pipeline_mode<synchronous>, transform_indices = @transform_9, window_bounds = array<i64: 2, 1, 32>}, {pipeline_mode = #tpu.pipeline_mode<synchronous>, transform_indices = @transform_10, window_bounds = array<i64: 2, 1, 32>}, {pipeline_mode = #tpu.pipeline_mode<synchronous>, transform_indices = @transform_11, window_bounds = array<i64: 2, 1, 32>}, {pipeline_mode = #tpu.pipeline_mode<synchronous>, transform_indices = @transform_12, window_bounds = array<i64: 2, 1, 64>}, {pipeline_mode = #tpu.pipeline_mode<synchronous>, transform_indices = @transform_13, window_bounds = array<i64: 2, 1, 32>}, {pipeline_mode = #tpu.pipeline_mode<synchronous>, transform_indices = @transform_14, window_bounds = array<i64: 2, 1, 32>}, {pipeline_mode = #tpu.pipeline_mode<synchronous>, transform_indices = @transform_15, window_bounds = array<i64: 2, 1, 32>}, {pipeline_mode = #tpu.pipeline_mode<synchronous>, transform_indices = @transform_16, window_bounds = array<i64: 16, 32>}]} {
    %c0_i32 = arith.constant 0 : i32
    %0 = arith.cmpi eq, %arg0, %c0_i32 : i32
    %1 = arith.extui %0 : i1 to i32
    %c0_i32_0 = arith.constant 0 : i32
    %2 = arith.cmpi ne, %1, %c0_i32_0 : i32
    scf.if %2 {
      tpu.enqueue_dma source(%arg1 : memref<16x32xf32, #tpu.memory_space<any>>) target(%arg18 : memref<16x32xf32, #tpu.memory_space<vmem>>) target_semaphore(%arg19 : memref<!tpu.dma_semaphore, #tpu.memory_space<semaphore_mem>>)
      tpu.wait_dma2 semaphore(%arg19 : memref<!tpu.dma_semaphore, #tpu.memory_space<semaphore_mem>>) src(%arg1 : memref<16x32xf32, #tpu.memory_space<any>>) dst(%arg18 : memref<16x32xf32, #tpu.memory_space<vmem>>)
      %c0_63 = arith.constant 0 : index
      %c0_64 = arith.constant 0 : index
      %166 = vector.load %arg18[%c0_63, %c0_64] : memref<16x32xf32, #tpu.memory_space<vmem>>, vector<16x32xf32>
      %c0_65 = arith.constant 0 : index
      %c0_66 = arith.constant 0 : index
      %167 = vector.load %arg3[%c0_65, %c0_66] : memref<1x32xf32, #tpu.memory_space<vmem>>, vector<1x32xf32>
      %c0_67 = arith.constant 0 : index
      %c0_68 = arith.constant 0 : index
      %168 = vector.load %arg4[%c0_67, %c0_68] : memref<1x32xf32, #tpu.memory_space<vmem>>, vector<1x32xf32>
      %cst_69 = arith.constant dense<0.000000e+00> : vector<16xf32>
      %169 = vector.multi_reduction <add>, %166, %cst_69 [1] : vector<16x32xf32> to vector<16xf32>
      %170 = vector.shape_cast %169 : vector<16xf32> to vector<16x1xf32>
      %cst_70 = arith.constant 3.200000e+01 : f32
      %171 = vector.broadcast %cst_70 : f32 to vector<16x1xf32>
      %172 = arith.divf %170, %171 : vector<16x1xf32>
      %173 = vector.broadcast %172 : vector<16x1xf32> to vector<16x32xf32>
      %174 = arith.subf %166, %173 : vector<16x32xf32>
      %175 = arith.mulf %174, %174 : vector<16x32xf32>
      %cst_71 = arith.constant dense<0.000000e+00> : vector<16xf32>
      %176 = vector.multi_reduction <add>, %175, %cst_71 [1] : vector<16x32xf32> to vector<16xf32>
      %177 = vector.shape_cast %176 : vector<16xf32> to vector<16x1xf32>
      %cst_72 = arith.constant 3.200000e+01 : f32
      %178 = vector.broadcast %cst_72 : f32 to vector<16x1xf32>
      %179 = arith.divf %177, %178 : vector<16x1xf32>
      %180 = vector.broadcast %172 : vector<16x1xf32> to vector<16x32xf32>
      %181 = arith.subf %166, %180 : vector<16x32xf32>
      %cst_73 = arith.constant 9.99999996E-13 : f32
      %182 = vector.broadcast %cst_73 : f32 to vector<16x1xf32>
      %183 = arith.addf %179, %182 : vector<16x1xf32>
      %184 = math.rsqrt %183 : vector<16x1xf32>
      %185 = vector.broadcast %184 : vector<16x1xf32> to vector<16x32xf32>
      %186 = arith.mulf %181, %185 : vector<16x32xf32>
      %187 = vector.broadcast %167 : vector<1x32xf32> to vector<16x32xf32>
      %188 = arith.mulf %186, %187 : vector<16x32xf32>
      %189 = vector.broadcast %168 : vector<1x32xf32> to vector<16x32xf32>
      %190 = arith.addf %188, %189 : vector<16x32xf32>
      %c0_74 = arith.constant 0 : index
      %c0_75 = arith.constant 0 : index
      %191 = vector.load %arg18[%c0_74, %c0_75] : memref<16x32xf32, #tpu.memory_space<vmem>>, vector<16x32xf32>
      tpu.vector_store %arg18[%c0_74, %c0_75], %190 {strides = array<i32>} : memref<16x32xf32, #tpu.memory_space<vmem>>, vector<16x32xf32>,
    } else {
    }
    %c0 = arith.constant 0 : index
    %c0_1 = arith.constant 0 : index
    %3 = vector.load %arg18[%c0, %c0_1] : memref<16x32xf32, #tpu.memory_space<vmem>>, vector<16x32xf32>
    %4 = arith.truncf %3 : vector<16x32xf32> to vector<16x32xbf16>
    %c0_2 = arith.constant 0 : index
    %c0_3 = arith.constant 0 : index
    %c0_4 = arith.constant 0 : index
    %5 = vector.load %arg5[%c0_2, %c0_3, %c0_4] : memref<1x32x96xbf16, #tpu.memory_space<vmem>>, vector<1x32x96xbf16>
    %6 = vector.shape_cast %5 : vector<1x32x96xbf16> to vector<32x96xbf16>
    %cst = arith.constant dense<0.000000e+00> : vector<16x96xf32>
    %7 = tpu.matmul %4, %6, %cst {dimension_numbers = #tpu.dot_dimension_numbers<[1], [0], [0], [1], [0, 0, 1, 1], [], []>} : vector<16x32xbf16>, vector<32x96xbf16>, vector<16x96xf32> -> vector<16x96xf32>
    %8 = arith.index_cast %arg0 : i32 to index
    %c0_5 = arith.constant 0 : index
    %c0_6 = arith.constant 0 : index
    %9 = vector.load %arg9[%8, %c0_5, %c0_6] : memref<2x1x96xf32, #tpu.memory_space<vmem>>, vector<1x1x96xf32>
    %10 = vector.shape_cast %9 : vector<1x1x96xf32> to vector<1x96xf32>
    %11 = vector.broadcast %10 : vector<1x96xf32> to vector<16x96xf32>
    %12 = arith.addf %7, %11 : vector<16x96xf32>
    %13 = arith.truncf %12 : vector<16x96xf32> to vector<16x96xbf16>
    %c0_7 = arith.constant 0 : index
    %c0_8 = arith.constant 0 : index
    %c0_9 = arith.constant 0 : index
    %14 = vector.load %arg2[%c0_7, %c0_8, %c0_9] : memref<2x1x8xf32, #tpu.memory_space<vmem>>, vector<2x1x8xf32>
    %15 = vector.extract_strided_slice %13 {offsets = [0, 0], sizes = [16, 16], strides = [1, 1]} : vector<16x96xbf16> to vector<16x16xbf16>
    %16 = vector.shape_cast %15 : vector<16x16xbf16> to vector<2x8x16xbf16>
    %17 = vector.extract_strided_slice %13 {offsets = [0, 32], sizes = [16, 16], strides = [1, 1]} : vector<16x96xbf16> to vector<16x16xbf16>
    %18 = vector.shape_cast %17 : vector<16x16xbf16> to vector<2x8x16xbf16>
    %19 = vector.extract_strided_slice %13 {offsets = [0, 64], sizes = [16, 16], strides = [1, 1]} : vector<16x96xbf16> to vector<16x16xbf16>
    %20 = vector.shape_cast %19 : vector<16x16xbf16> to vector<2x8x16xbf16>
    "tpu.trace_start"() <{level = 10 : i32, message = "bqd,bkd->bqk"}> : () -> ()
    %cst_10 = arith.constant dense<0.000000e+00> : vector<2x8x8xf32>
    %21 = tpu.matmul %16, %18, %cst_10 {dimension_numbers = #tpu.dot_dimension_numbers<[2], [2], [1], [1], [0, 0, 0, 1, 1, 1], [0], [0]>} : vector<2x8x16xbf16>, vector<2x8x16xbf16>, vector<2x8x8xf32> -> vector<2x8x8xf32>
    "tpu.trace_stop"() : () -> ()
    %cst_11 = arith.constant 2.500000e-01 : f32
    %22 = vector.broadcast %cst_11 : f32 to vector<2x8x8xf32>
    %23 = arith.mulf %21, %22 : vector<2x8x8xf32>
    %24 = vector.broadcast %14 : vector<2x1x8xf32> to vector<2x8x8xf32>
    %25 = arith.addf %23, %24 : vector<2x8x8xf32>
    %cst_12 = arith.constant dense<0xFF800000> : vector<2x8xf32>
    %26 = vector.multi_reduction <maximumf>, %25, %cst_12 [2] : vector<2x8x8xf32> to vector<2x8xf32>
    %27 = vector.shape_cast %26 : vector<2x8xf32> to vector<2x8x1xf32>
    %28 = vector.broadcast %27 : vector<2x8x1xf32> to vector<2x8x8xf32>
    %29 = arith.subf %25, %28 : vector<2x8x8xf32>
    %30 = math.exp %29 : vector<2x8x8xf32>
    %cst_13 = arith.constant dense<0.000000e+00> : vector<2x8xf32>
    %31 = vector.multi_reduction <add>, %30, %cst_13 [2] : vector<2x8x8xf32> to vector<2x8xf32>
    %32 = vector.shape_cast %31 : vector<2x8xf32> to vector<2x8x1xf32>
    %33 = tpu.reciprocal %32 {approx = true} : vector<2x8x1xf32> -> vector<2x8x1xf32>
    %34 = vector.broadcast %33 : vector<2x8x1xf32> to vector<2x8x8xf32>
    %35 = arith.mulf %30, %34 : vector<2x8x8xf32>
    %36 = arith.truncf %35 : vector<2x8x8xf32> to vector<2x8x8xbf16>
    "tpu.trace_start"() <{level = 10 : i32, message = "bqk,bkd->bqd"}> : () -> ()
    %cst_14 = arith.constant dense<0.000000e+00> : vector<2x8x16xf32>
    %37 = tpu.matmul %36, %20, %cst_14 {dimension_numbers = #tpu.dot_dimension_numbers<[2], [1], [1], [2], [0, 0, 0, 1, 1, 2], [0], [0]>} : vector<2x8x8xbf16>, vector<2x8x16xbf16>, vector<2x8x16xf32> -> vector<2x8x16xf32>
    "tpu.trace_stop"() : () -> ()
    %38 = vector.shape_cast %37 : vector<2x8x16xf32> to vector<16x16xf32>
    %39 = vector.extract_strided_slice %13 {offsets = [0, 16], sizes = [16, 16], strides = [1, 1]} : vector<16x96xbf16> to vector<16x16xbf16>
    %40 = vector.shape_cast %39 : vector<16x16xbf16> to vector<2x8x16xbf16>
    %41 = vector.extract_strided_slice %13 {offsets = [0, 48], sizes = [16, 16], strides = [1, 1]} : vector<16x96xbf16> to vector<16x16xbf16>
    %42 = vector.shape_cast %41 : vector<16x16xbf16> to vector<2x8x16xbf16>
    %43 = vector.extract_strided_slice %13 {offsets = [0, 80], sizes = [16, 16], strides = [1, 1]} : vector<16x96xbf16> to vector<16x16xbf16>
    %44 = vector.shape_cast %43 : vector<16x16xbf16> to vector<2x8x16xbf16>
    "tpu.trace_start"() <{level = 10 : i32, message = "bqd,bkd->bqk"}> : () -> ()
    %cst_15 = arith.constant dense<0.000000e+00> : vector<2x8x8xf32>
    %45 = tpu.matmul %40, %42, %cst_15 {dimension_numbers = #tpu.dot_dimension_numbers<[2], [2], [1], [1], [0, 0, 0, 1, 1, 1], [0], [0]>} : vector<2x8x16xbf16>, vector<2x8x16xbf16>, vector<2x8x8xf32> -> vector<2x8x8xf32>
    "tpu.trace_stop"() : () -> ()
    %cst_16 = arith.constant 2.500000e-01 : f32
    %46 = vector.broadcast %cst_16 : f32 to vector<2x8x8xf32>
    %47 = arith.mulf %45, %46 : vector<2x8x8xf32>
    %48 = vector.broadcast %14 : vector<2x1x8xf32> to vector<2x8x8xf32>
    %49 = arith.addf %47, %48 : vector<2x8x8xf32>
    %cst_17 = arith.constant dense<0xFF800000> : vector<2x8xf32>
    %50 = vector.multi_reduction <maximumf>, %49, %cst_17 [2] : vector<2x8x8xf32> to vector<2x8xf32>
    %51 = vector.shape_cast %50 : vector<2x8xf32> to vector<2x8x1xf32>
    %52 = vector.broadcast %51 : vector<2x8x1xf32> to vector<2x8x8xf32>
    %53 = arith.subf %49, %52 : vector<2x8x8xf32>
    %54 = math.exp %53 : vector<2x8x8xf32>
    %cst_18 = arith.constant dense<0.000000e+00> : vector<2x8xf32>
    %55 = vector.multi_reduction <add>, %54, %cst_18 [2] : vector<2x8x8xf32> to vector<2x8xf32>
    %56 = vector.shape_cast %55 : vector<2x8xf32> to vector<2x8x1xf32>
    %57 = tpu.reciprocal %56 {approx = true} : vector<2x8x1xf32> -> vector<2x8x1xf32>
    %58 = vector.broadcast %57 : vector<2x8x1xf32> to vector<2x8x8xf32>
    %59 = arith.mulf %54, %58 : vector<2x8x8xf32>
    %60 = arith.truncf %59 : vector<2x8x8xf32> to vector<2x8x8xbf16>
    "tpu.trace_start"() <{level = 10 : i32, message = "bqk,bkd->bqd"}> : () -> ()
    %cst_19 = arith.constant dense<0.000000e+00> : vector<2x8x16xf32>
    %61 = tpu.matmul %60, %44, %cst_19 {dimension_numbers = #tpu.dot_dimension_numbers<[2], [1], [1], [2], [0, 0, 0, 1, 1, 2], [0], [0]>} : vector<2x8x8xbf16>, vector<2x8x16xbf16>, vector<2x8x16xf32> -> vector<2x8x16xf32>
    "tpu.trace_stop"() : () -> ()
    %62 = vector.shape_cast %61 : vector<2x8x16xf32> to vector<16x16xf32>
    %63 = tpu.concatenate %38, %62 in 1 : vector<16x16xf32>, vector<16x16xf32> -> vector<16x32xf32>
    %64 = arith.truncf %63 : vector<16x32xf32> to vector<16x32xbf16>
    %c0_20 = arith.constant 0 : index
    %c0_21 = arith.constant 0 : index
    %c0_22 = arith.constant 0 : index
    %65 = vector.load %arg6[%c0_20, %c0_21, %c0_22] : memref<1x32x32xbf16, #tpu.memory_space<vmem>>, vector<1x32x32xbf16>
    %66 = vector.shape_cast %65 : vector<1x32x32xbf16> to vector<32x32xbf16>
    %cst_23 = arith.constant dense<0.000000e+00> : vector<16x32xf32>
    %67 = tpu.matmul %64, %66, %cst_23 {dimension_numbers = #tpu.dot_dimension_numbers<[1], [0], [0], [1], [0, 0, 1, 1], [], []>} : vector<16x32xbf16>, vector<32x32xbf16>, vector<16x32xf32> -> vector<16x32xf32>
    %68 = arith.index_cast %arg0 : i32 to index
    %c0_24 = arith.constant 0 : index
    %c0_25 = arith.constant 0 : index
    %69 = vector.load %arg10[%68, %c0_24, %c0_25] : memref<2x1x32xf32, #tpu.memory_space<vmem>>, vector<1x1x32xf32>
    %70 = vector.shape_cast %69 : vector<1x1x32xf32> to vector<1x32xf32>
    %71 = vector.broadcast %70 : vector<1x32xf32> to vector<16x32xf32>
    %72 = arith.addf %67, %71 : vector<16x32xf32>
    %73 = arith.addf %72, %3 : vector<16x32xf32>
    %74 = arith.index_cast %arg0 : i32 to index
    %c0_26 = arith.constant 0 : index
    %c0_27 = arith.constant 0 : index
    %75 = vector.load %arg11[%74, %c0_26, %c0_27] : memref<2x1x32xf32, #tpu.memory_space<vmem>>, vector<1x1x32xf32>
    %76 = vector.shape_cast %75 : vector<1x1x32xf32> to vector<1x32xf32>
    %77 = arith.index_cast %arg0 : i32 to index
    %c0_28 = arith.constant 0 : index
    %c0_29 = arith.constant 0 : index
    %78 = vector.load %arg12[%77, %c0_28, %c0_29] : memref<2x1x32xf32, #tpu.memory_space<vmem>>, vector<1x1x32xf32>
    %79 = vector.shape_cast %78 : vector<1x1x32xf32> to vector<1x32xf32>
    %cst_30 = arith.constant dense<0.000000e+00> : vector<16xf32>
    %80 = vector.multi_reduction <add>, %73, %cst_30 [1] : vector<16x32xf32> to vector<16xf32>
    %81 = vector.shape_cast %80 : vector<16xf32> to vector<16x1xf32>
    %cst_31 = arith.constant 3.200000e+01 : f32
    %82 = vector.broadcast %cst_31 : f32 to vector<16x1xf32>
    %83 = arith.divf %81, %82 : vector<16x1xf32>
    %84 = vector.broadcast %83 : vector<16x1xf32> to vector<16x32xf32>
    %85 = arith.subf %73, %84 : vector<16x32xf32>
    %86 = arith.mulf %85, %85 : vector<16x32xf32>
    %cst_32 = arith.constant dense<0.000000e+00> : vector<16xf32>
    %87 = vector.multi_reduction <add>, %86, %cst_32 [1] : vector<16x32xf32> to vector<16xf32>
    %88 = vector.shape_cast %87 : vector<16xf32> to vector<16x1xf32>
    %cst_33 = arith.constant 3.200000e+01 : f32
    %89 = vector.broadcast %cst_33 : f32 to vector<16x1xf32>
    %90 = arith.divf %88, %89 : vector<16x1xf32>
    %91 = vector.broadcast %83 : vector<16x1xf32> to vector<16x32xf32>
    %92 = arith.subf %73, %91 : vector<16x32xf32>
    %cst_34 = arith.constant 9.99999996E-13 : f32
    %93 = vector.broadcast %cst_34 : f32 to vector<16x1xf32>
    %94 = arith.addf %90, %93 : vector<16x1xf32>
    %95 = math.rsqrt %94 : vector<16x1xf32>
    %96 = vector.broadcast %95 : vector<16x1xf32> to vector<16x32xf32>
    %97 = arith.mulf %92, %96 : vector<16x32xf32>
    %98 = vector.broadcast %76 : vector<1x32xf32> to vector<16x32xf32>
    %99 = arith.mulf %97, %98 : vector<16x32xf32>
    %100 = vector.broadcast %79 : vector<1x32xf32> to vector<16x32xf32>
    %101 = arith.addf %99, %100 : vector<16x32xf32>
    %102 = arith.truncf %101 : vector<16x32xf32> to vector<16x32xbf16>
    %c0_35 = arith.constant 0 : index
    %c0_36 = arith.constant 0 : index
    %c0_37 = arith.constant 0 : index
    %103 = vector.load %arg7[%c0_35, %c0_36, %c0_37] : memref<1x32x64xbf16, #tpu.memory_space<vmem>>, vector<1x32x64xbf16>
    %104 = vector.shape_cast %103 : vector<1x32x64xbf16> to vector<32x64xbf16>
    %cst_38 = arith.constant dense<0.000000e+00> : vector<16x64xf32>
    %105 = tpu.matmul %102, %104, %cst_38 {dimension_numbers = #tpu.dot_dimension_numbers<[1], [0], [0], [1], [0, 0, 1, 1], [], []>} : vector<16x32xbf16>, vector<32x64xbf16>, vector<16x64xf32> -> vector<16x64xf32>
    %106 = arith.index_cast %arg0 : i32 to index
    %c0_39 = arith.constant 0 : index
    %c0_40 = arith.constant 0 : index
    %107 = vector.load %arg13[%106, %c0_39, %c0_40] : memref<2x1x64xf32, #tpu.memory_space<vmem>>, vector<1x1x64xf32>
    %108 = vector.shape_cast %107 : vector<1x1x64xf32> to vector<1x64xf32>
    %109 = vector.broadcast %108 : vector<1x64xf32> to vector<16x64xf32>
    %110 = arith.addf %105, %109 : vector<16x64xf32>
    %cst_41 = arith.constant 5.000000e-01 : f32
    %111 = vector.broadcast %cst_41 : f32 to vector<16x64xf32>
    %112 = arith.mulf %111, %110 : vector<16x64xf32>
    %cst_42 = arith.constant 4.471500e-02 : f32
    %113 = vector.broadcast %cst_42 : f32 to vector<16x64xf32>
    %114 = arith.mulf %113, %110 : vector<16x64xf32>
    %115 = arith.mulf %114, %110 : vector<16x64xf32>
    %116 = arith.mulf %115, %110 : vector<16x64xf32>
    %117 = arith.addf %110, %116 : vector<16x64xf32>
    %cst_43 = arith.constant 0.797884583 : f32
    %118 = vector.broadcast %cst_43 : f32 to vector<16x64xf32>
    %119 = arith.mulf %118, %117 : vector<16x64xf32>
    %120 = math.tanh %119 : vector<16x64xf32>
    %cst_44 = arith.constant 1.000000e+00 : f32
    %121 = vector.broadcast %cst_44 : f32 to vector<16x64xf32>
    %122 = arith.addf %121, %120 : vector<16x64xf32>
    %123 = arith.mulf %112, %122 : vector<16x64xf32>
    %124 = arith.truncf %123 : vector<16x64xf32> to vector<16x64xbf16>
    %c0_45 = arith.constant 0 : index
    %c0_46 = arith.constant 0 : index
    %c0_47 = arith.constant 0 : index
    %125 = vector.load %arg8[%c0_45, %c0_46, %c0_47] : memref<1x64x32xbf16, #tpu.memory_space<vmem>>, vector<1x64x32xbf16>
    %126 = vector.shape_cast %125 : vector<1x64x32xbf16> to vector<64x32xbf16>
    %cst_48 = arith.constant dense<0.000000e+00> : vector<16x32xf32>
    %127 = tpu.matmul %124, %126, %cst_48 {dimension_numbers = #tpu.dot_dimension_numbers<[1], [0], [0], [1], [0, 0, 1, 1], [], []>} : vector<16x64xbf16>, vector<64x32xbf16>, vector<16x32xf32> -> vector<16x32xf32>
    %128 = arith.index_cast %arg0 : i32 to index
    %c0_49 = arith.constant 0 : index
    %c0_50 = arith.constant 0 : index
    %129 = vector.load %arg14[%128, %c0_49, %c0_50] : memref<2x1x32xf32, #tpu.memory_space<vmem>>, vector<1x1x32xf32>
    %130 = vector.shape_cast %129 : vector<1x1x32xf32> to vector<1x32xf32>
    %131 = vector.broadcast %130 : vector<1x32xf32> to vector<16x32xf32>
    %132 = arith.addf %127, %131 : vector<16x32xf32>
    %133 = arith.addf %132, %101 : vector<16x32xf32>
    %134 = arith.index_cast %arg0 : i32 to index
    %c0_51 = arith.constant 0 : index
    %c0_52 = arith.constant 0 : index
    %135 = vector.load %arg15[%134, %c0_51, %c0_52] : memref<2x1x32xf32, #tpu.memory_space<vmem>>, vector<1x1x32xf32>
    %136 = vector.shape_cast %135 : vector<1x1x32xf32> to vector<1x32xf32>
    %137 = arith.index_cast %arg0 : i32 to index
    %c0_53 = arith.constant 0 : index
    %c0_54 = arith.constant 0 : index
    %138 = vector.load %arg16[%137, %c0_53, %c0_54] : memref<2x1x32xf32, #tpu.memory_space<vmem>>, vector<1x1x32xf32>
    %139 = vector.shape_cast %138 : vector<1x1x32xf32> to vector<1x32xf32>
    %cst_55 = arith.constant dense<0.000000e+00> : vector<16xf32>
    %140 = vector.multi_reduction <add>, %133, %cst_55 [1] : vector<16x32xf32> to vector<16xf32>
    %141 = vector.shape_cast %140 : vector<16xf32> to vector<16x1xf32>
    %cst_56 = arith.constant 3.200000e+01 : f32
    %142 = vector.broadcast %cst_56 : f32 to vector<16x1xf32>
    %143 = arith.divf %141, %142 : vector<16x1xf32>
    %144 = vector.broadcast %143 : vector<16x1xf32> to vector<16x32xf32>
    %145 = arith.subf %133, %144 : vector<16x32xf32>
    %146 = arith.mulf %145, %145 : vector<16x32xf32>
    %cst_57 = arith.constant dense<0.000000e+00> : vector<16xf32>
    %147 = vector.multi_reduction <add>, %146, %cst_57 [1] : vector<16x32xf32> to vector<16xf32>
    %148 = vector.shape_cast %147 : vector<16xf32> to vector<16x1xf32>
    %cst_58 = arith.constant 3.200000e+01 : f32
    %149 = vector.broadcast %cst_58 : f32 to vector<16x1xf32>
    %150 = arith.divf %148, %149 : vector<16x1xf32>
    %151 = vector.broadcast %143 : vector<16x1xf32> to vector<16x32xf32>
    %152 = arith.subf %133, %151 : vector<16x32xf32>
    %cst_59 = arith.constant 9.99999996E-13 : f32
    %153 = vector.broadcast %cst_59 : f32 to vector<16x1xf32>
    %154 = arith.addf %150, %153 : vector<16x1xf32>
    %155 = math.rsqrt %154 : vector<16x1xf32>
    %156 = vector.broadcast %155 : vector<16x1xf32> to vector<16x32xf32>
    %157 = arith.mulf %152, %156 : vector<16x32xf32>
    %158 = vector.broadcast %136 : vector<1x32xf32> to vector<16x32xf32>
    %159 = arith.mulf %157, %158 : vector<16x32xf32>
    %160 = vector.broadcast %139 : vector<1x32xf32> to vector<16x32xf32>
    %161 = arith.addf %159, %160 : vector<16x32xf32>
    %c0_60 = arith.constant 0 : index
    %c0_61 = arith.constant 0 : index
    %162 = vector.load %arg18[%c0_60, %c0_61] : memref<16x32xf32, #tpu.memory_space<vmem>>, vector<16x32xf32>
    tpu.vector_store %arg18[%c0_60, %c0_61], %161 {strides = array<i32>} : memref<16x32xf32, #tpu.memory_space<vmem>>, vector<16x32xf32>,
    %c1_i32 = arith.constant 1 : i32
    %163 = arith.cmpi eq, %arg0, %c1_i32 : i32
    %164 = arith.extui %163 : i1 to i32
    %c0_i32_62 = arith.constant 0 : i32
    %165 = arith.cmpi ne, %164, %c0_i32_62 : i32
    scf.if %165 {
      %c0_63 = arith.constant 0 : index
      %c0_64 = arith.constant 0 : index
      %166 = vector.load %arg18[%c0_63, %c0_64] : memref<16x32xf32, #tpu.memory_space<vmem>>, vector<16x32xf32>
      %c0_65 = arith.constant 0 : index
      %c0_66 = arith.constant 0 : index
      %167 = vector.load %arg17[%c0_65, %c0_66] : memref<16x32xf32, #tpu.memory_space<vmem>>, vector<16x32xf32>
      tpu.vector_store %arg17[%c0_65, %c0_66], %166 {strides = array<i32>} : memref<16x32xf32, #tpu.memory_space<vmem>>, vector<16x32xf32>,
    } else {
    }
    return
  }
  func.func @transform_1(%arg0: i32) -> (i32, i32, i32) {
    %c0_i32 = arith.constant 0 : i32
    %c0_i32_0 = arith.constant 0 : i32
    %c0_i32_1 = arith.constant 0 : i32
    %c0_i32_2 = arith.constant 0 : i32
    return %c0_i32, %c0_i32_0, %c0_i32_1 : i32, i32, i32
  }
  func.func @transform_2(%arg0: i32) -> (i32, i32) {
    %c0_i32 = arith.constant 0 : i32
    %c0_i32_0 = arith.constant 0 : i32
    %c0_i32_1 = arith.constant 0 : i32
    return %c0_i32, %c0_i32_0 : i32, i32
  }
  func.func @transform_3(%arg0: i32) -> (i32, i32) {
    %c0_i32 = arith.constant 0 : i32
    %c0_i32_0 = arith.constant 0 : i32
    %c0_i32_1 = arith.constant 0 : i32
    return %c0_i32, %c0_i32_0 : i32, i32
  }
  func.func @transform_4(%arg0: i32) -> (i32, i32, i32) {
    %c0_i32 = arith.constant 0 : i32
    %c0_i32_0 = arith.constant 0 : i32
    %c0_i32_1 = arith.constant 0 : i32
    return %arg0, %c0_i32, %c0_i32_0 : i32, i32, i32
  }
  func.func @transform_5(%arg0: i32) -> (i32, i32, i32) {
    %c0_i32 = arith.constant 0 : i32
    %c0_i32_0 = arith.constant 0 : i32
    %c0_i32_1 = arith.constant 0 : i32
    return %arg0, %c0_i32, %c0_i32_0 : i32, i32, i32
  }
  func.func @transform_6(%arg0: i32) -> (i32, i32, i32) {
    %c0_i32 = arith.constant 0 : i32
    %c0_i32_0 = arith.constant 0 : i32
    %c0_i32_1 = arith.constant 0 : i32
    return %arg0, %c0_i32, %c0_i32_0 : i32, i32, i32
  }
  func.func @transform_7(%arg0: i32) -> (i32, i32, i32) {
    %c0_i32 = arith.constant 0 : i32
    %c0_i32_0 = arith.constant 0 : i32
    %c0_i32_1 = arith.constant 0 : i32
    return %arg0, %c0_i32, %c0_i32_0 : i32, i32, i32
  }
  func.func @transform_8(%arg0: i32) -> (i32, i32, i32) {
    %c0_i32 = arith.constant 0 : i32
    %c0_i32_0 = arith.constant 0 : i32
    %c0_i32_1 = arith.constant 0 : i32
    %c0_i32_2 = arith.constant 0 : i32
    return %c0_i32, %c0_i32_0, %c0_i32_1 : i32, i32, i32
  }
  func.func @transform_9(%arg0: i32) -> (i32, i32, i32) {
    %c0_i32 = arith.constant 0 : i32
    %c0_i32_0 = arith.constant 0 : i32
    %c0_i32_1 = arith.constant 0 : i32
    %c0_i32_2 = arith.constant 0 : i32
    return %c0_i32, %c0_i32_0, %c0_i32_1 : i32, i32, i32
  }
  func.func @transform_10(%arg0: i32) -> (i32, i32, i32) {
    %c0_i32 = arith.constant 0 : i32
    %c0_i32_0 = arith.constant 0 : i32
    %c0_i32_1 = arith.constant 0 : i32
    %c0_i32_2 = arith.constant 0 : i32
    return %c0_i32, %c0_i32_0, %c0_i32_1 : i32, i32, i32
  }
  func.func @transform_11(%arg0: i32) -> (i32, i32, i32) {
    %c0_i32 = arith.constant 0 : i32
    %c0_i32_0 = arith.constant 0 : i32
    %c0_i32_1 = arith.constant 0 : i32
    %c0_i32_2 = arith.constant 0 : i32
    return %c0_i32, %c0_i32_0, %c0_i32_1 : i32, i32, i32
  }
  func.func @transform_12(%arg0: i32) -> (i32, i32, i32) {
    %c0_i32 = arith.constant 0 : i32
    %c0_i32_0 = arith.constant 0 : i32
    %c0_i32_1 = arith.constant 0 : i32
    %c0_i32_2 = arith.constant 0 : i32
    return %c0_i32, %c0_i32_0, %c0_i32_1 : i32, i32, i32
  }
  func.func @transform_13(%arg0: i32) -> (i32, i32, i32) {
    %c0_i32 = arith.constant 0 : i32
    %c0_i32_0 = arith.constant 0 : i32
    %c0_i32_1 = arith.constant 0 : i32
    %c0_i32_2 = arith.constant 0 : i32
    return %c0_i32, %c0_i32_0, %c0_i32_1 : i32, i32, i32
  }
  func.func @transform_14(%arg0: i32) -> (i32, i32, i32) {
    %c0_i32 = arith.constant 0 : i32
    %c0_i32_0 = arith.constant 0 : i32
    %c0_i32_1 = arith.constant 0 : i32
    %c0_i32_2 = arith.constant 0 : i32
    return %c0_i32, %c0_i32_0, %c0_i32_1 : i32, i32, i32
  }
  func.func @transform_15(%arg0: i32) -> (i32, i32, i32) {
    %c0_i32 = arith.constant 0 : i32
    %c0_i32_0 = arith.constant 0 : i32
    %c0_i32_1 = arith.constant 0 : i32
    %c0_i32_2 = arith.constant 0 : i32
    return %c0_i32, %c0_i32_0, %c0_i32_1 : i32, i32, i32
  }
  func.func @transform_16(%arg0: i32) -> (i32, i32) {
    %c0_i32 = arith.constant 0 : i32
    %c0_i32_0 = arith.constant 0 : i32
    %c0_i32_1 = arith.constant 0 : i32
    return %c0_i32, %c0_i32_0 : i32, i32
  }
}

</mosaic_0001>

<bundles_post_ra>
// kernel: tpu_custom_call.1
= control target key start
LH: loop header
LB: loop body
LE: loop exit
PB: predicated region body
PF: predicated region fallthrough
CT: control target
= control target key end

     0   :  { %s2475_s0 = inlined_call_operand.hbm [shape: f32[16,32], index: 0, kind: input, shape index: {}]   ;;  %s2476_s1 = inlined_call_operand.vmem [shape: f32[2,1,8], index: 1, kind: input, shape index: {}]   ;;  %s2477_s2 = inlined_call_operand.hbm [shape: f32[1,32], index: 2, kind: input, shape index: {}]   ;;  %s2478_s3 = inlined_call_operand.hbm [shape: f32[1,32], index: 3, kind: input, shape index: {}]   ;;  %s2479_s4 = inlined_call_operand.vmem [shape: bf16[2,32,96], index: 4, kind: input, shape index: {}]   ;;  %s2480_s5 = inlined_call_operand.vmem [shape: bf16[2,32,32], index: 5, kind: input, shape index: {}]   ;;  %s2481_s6 = inlined_call_operand.vmem [shape: bf16[2,32,64], index: 6, kind: input, shape index: {}]   ;;  %s2482_s7 = inlined_call_operand.vmem [shape: bf16[2,64,32], index: 7, kind: input, shape index: {}]   ;;  %s2483_s8 = inlined_call_operand.vmem [shape: f32[2,1,96], index: 8, kind: input, shape index: {}]   ;;  %s2484_s9 = inlined_call_operand.vmem [shape: f32[2,1,32], index: 9, kind: input, shape index: {}]   ;;  %s2485_s10 = inlined_call_operand.vmem [shape: f32[2,1,32], index: 10, kind: input, shape index: {}]   ;;  %s2486_s11 = inlined_call_operand.vmem [shape: f32[2,1,32], index: 11, kind: input, shape index: {}]   ;;  %s2487_s12 = inlined_call_operand.vmem [shape: f32[2,1,64], index: 12, kind: input, shape index: {}]   ;;  %s2488_s13 = inlined_call_operand.vmem [shape: f32[2,1,32], index: 13, kind: input, shape index: {}]   ;;  %s2489_s14 = inlined_call_operand.vmem [shape: f32[2,1,32], index: 14, kind: input, shape index: {}]   ;;  %s2490_s15 = inlined_call_operand.vmem [shape: f32[2,1,32], index: 15, kind: input, shape index: {}]   ;;  %s2491_s16 = inlined_call_operand.hbm [shape: f32[16,32], index: 16, kind: output, shape index: {}]  }
   0x1   :  { %2496 = sst [smem:[#allocation19_spill]] %s2475_s0 }
   0x2   :  { %2497 = sst [smem:[#allocation20_spill]] %s2477_s2 }
   0x3   :  { %2498 = sst [smem:[#allocation21_spill]] %s2478_s3 }
   0x4   :  { %2499 = sst [smem:[#allocation22_spill]] %s2479_s4 }
   0x5   :  { %2500 = sst [smem:[#allocation23_spill]] %s2480_s5 }
   0x6   :  { %21 = vsyncpa [#allocation5], 0 }
   0x7   :  { %22 = vsyncpa [#allocation8], 0 }
   0x8   :  { %23 = vsyncpa [#allocation6], 0  ;;  %s2153_s21 = smov 0  }
   0x9 LB: > { %2501 = sst [smem:[#allocation18_spill]] %s2052_s21  ;;  %s2159_s22 = sadd.s32 4294967295, %s2052_s21   ;;  %s2052_s21 = sphi %s2153_s21, %s29_s21  }
   0xa   : > { %p1656_p0 = scmp.ge.s32.totalorder %s2052_s21, 1  ;;  %p390_p1 = scmp.lt.s32.totalorder %s2052_s21, 3 }
   0xb   : > { %p2493_p3 = scmp.eq.s32.totalorder %s2159_s22, 0  ;;  %s2054_s24 = smov [#allocation4]  }
   0xc   : > { %p2165_p4 = pnand %p1656_p0, %p390_p1  ;;  %s406_s25 = sshll.u32 %s2054_s24, 4  ;;  %s407_s25 = int_to_ptr.vmem [resolvable:$true] %s406_s25 }
   0xd   : > { %s2055_s26 = smov [#allocation7]   ;;  %s2504_s2 = sld [smem:[#allocation20_spill]] }
   0xe   : > { %s2502_s23 = scalar_select %p2165_p4, 1, 0 }
   0xf   : > { %p1846_p5 = pneg %p2165_p4  ;;  %s417_s27 = sshll.u32 %s2055_s26, 4  ;;  %s2177_s27 = int_to_ptr.vmem [resolvable:$true] %s417_s27 }
  0x11   : > { %p2173_p6 = pnand %p2493_p3, %p1846_p5 }
  0x13   : > { %s1928_s0 = scalar_lea.hbm %s2504_s2, 16  ;;  %p1930_p8 = pneg %p2173_p6 }
  0x14   : > { %p1929_p7 = scmp.ne.s32.totalorder %s2504_s2, %s1928_s0  ;;  %p1935_p11 = scmp.lt.u32.totalorder %s1928_s0, %s2504_s2 }
  0x16   : > { %p1931_p9 = pnand %p1930_p8, %p1929_p7 }
  0x18   : > { %p1932_p10 = pneg %p1931_p9 }
  0x1a   : > { %p1937_p12 = pnand %p1935_p11, %p1932_p10 }
  0x1c   : > { %1940 = shalt.err (!%p1937_p12)
}
  0x1d   : > { %s1941_s24 = scalar_lea.vmem %s407_s25, 16  ;;  %s1948_s26 = scalar_lea.vmem %s407_s25, 32 }
  0x1e   : > { %p1942_p13 = scmp.ne.s32.totalorder %s407_s25, %s1941_s24  ;;  %p1949_p5 = scmp.lt.s32.totalorder %s407_s25, %s407_s25 }
  0x1f   : > { %p1950_p2 = scmp.lt.s32.totalorder %s1948_s26, %s1941_s24 }
  0x20   : > { %p1944_p0 = pnand %p1942_p13, %p1930_p8 }
  0x21   : > { %p1951_p3 = por %p1950_p2, %p1949_p5 }
  0x22   : > { %p1945_p1 = pneg %p1944_p0 }
  0x24   : > { %p1952_p4 = pnand %p1951_p3, %p1945_p1 }
  0x26   : > { %1955 = shalt.err (!%p1952_p4)
}
  0x27   : > { %1849 = dma.hbm_to_vmem [thread:$0]  (!%p2173_p6), %s2504_s2, 16, %s407_s25, [#allocation5]  }
  0x28   : > { %s2505_s3 = sld [smem:[#allocation21_spill]] }
  0x2e   : > { %s1956_s18 = scalar_lea.hbm %s2505_s3, 16 }
  0x2f   : > { %p1957_p7 = scmp.ne.s32.totalorder %s2505_s3, %s1956_s18  ;;  %p1963_p4 = scmp.lt.u32.totalorder %s1956_s18, %s2505_s3 }
  0x31   : > { %p1959_p2 = pnand %p1957_p7, %p1930_p8 }
  0x33   : > { %p1960_p3 = pneg %p1959_p2 }
  0x35   : > { %p1965_p9 = pnand %p1963_p4, %p1960_p3 }
  0x37   : > { %1968 = shalt.err (!%p1965_p9)
}
  0x38   : > { %s1969_s25 = scalar_lea.vmem %s2177_s27, 16  ;;  %s1976_s29 = scalar_lea.vmem %s2177_s27, 32 }
  0x39   : > { %p1970_p10 = scmp.ne.s32.totalorder %s2177_s27, %s1969_s25  ;;  %p1977_p13 = scmp.lt.s32.totalorder %s2177_s27, %s2177_s27 }
  0x3a   : > { %p1978_p0 = scmp.lt.s32.totalorder %s1976_s29, %s1969_s25 }
  0x3b   : > { %p1972_p11 = pnand %p1970_p10, %p1930_p8 }
  0x3c   : > { %p1979_p1 = por %p1978_p0, %p1977_p13 }
  0x3d   : > { %p1973_p12 = pneg %p1972_p11 }
  0x3f   : > { %p1980_p5 = pnand %p1979_p1, %p1973_p12 }
  0x41   : > { %1983 = shalt.err (!%p1980_p5)
}
  0x42   : > { %1852 = dma.hbm_to_vmem [thread:$0]  (!%p2173_p6), %s2505_s3, 16, %s2177_s27, [#allocation8]  }
  0x43   : > { %p2506_p7 = scmp.ne.s32.totalorder %s2502_s23, 0 }
  0x44   : > { %p2507_p8 = scmp.eq.s32.totalorder (!%p2506_p7), %s2159_s22, 0 }
  0x45   : > { %486 = sbr.rel (%p2506_p7) target bundleno = 3525 (0xdc5), region = 80 }
  0x4c   : > { %2037 = dma.done.wait (%p2507_p8), [#allocation5], 16   ;;  %p2508_p2 = pmov %p2507_p8 }
  0x4e   : > { %2039 = vsyncadd (%p2508_p2), [#allocation5], 4294967280  ;;  %p2509_p3 = pmov %p2508_p2 }
  0x4f   : > { %p2510_p4 = pmov %p2508_p2 }
  0x50   : > { %2041 = dma.done.wait (%p2509_p3), [#allocation8], 16  }
  0x51   : > { %2043 = vsyncadd (%p2510_p4), [#allocation8], 4294967280  ;;  %p548_p9 = scmp.lt.s32.totalorder %s2159_s22, 1  ;;  %s2511_s4 = sld [smem:[#allocation22_spill]] }
  0x52   : > { %s2512_s5 = sld [smem:[#allocation23_spill]]  ;;  %p2513_p6 = scmp.ne.s32.totalorder %s2159_s22, 0 }
  0x53   : > { %s549_s28 = scalar_select %p548_p9, %s2159_s22, 1 }
  0x54   : > { %572 = sbr.rel (%p2513_p6) target bundleno = 425 (0x1a9), region = 92  ;;  %s2514_s24 = sld [smem:[#allocation19_spill]] (!%p2513_p6) }
  0x55   : > { %s1714_s27 = sshll.u32 %s549_s28, 4  ;;  %s1717_s17 = sshll.u32 %s549_s28, 5 }
  0x56   : > { %s2252_s30 = scalar_lea.vmem %s2481_s6, %s1714_s27  ;;  %s2257_s3 = scalar_lea.vmem %s2482_s7, %s1717_s17 }
  0x57   : > { %s2242_s19 = scalar_lea.vmem %s2511_s4, %s1714_s27  ;;  %s2056_s28 = smov (!%p2513_p6), [#allocation2]  }
  0x58   : > { %s2247_s26 = scalar_lea.vmem %s2512_s5, %s1714_s27  ;;  %s580_s23 = sshll.u32 (!%p2513_p6), %s2056_s28, 4  ;;  %s581_s23 = int_to_ptr.vmem [resolvable:$true] %s580_s23 }
  0x5a   : > { %s1984_s4 = scalar_lea.hbm (!%p2513_p6), %s2514_s24, 256 }
  0x5b   : > { %p1985_p10 = scmp.ne.s32.totalorder %s2514_s24, %s1984_s4  ;;  %p1988_p11 = scmp.lt.u32.totalorder %s1984_s4, %s2514_s24 }
  0x5d   : > { %p1990_p12 = pnand %p1988_p11, %p1985_p10 }
  0x5f   : > { %1993 = shalt.err (!%p1990_p12)  }
  0x60   : > { %s1994_s2 = scalar_lea.vmem %s581_s23, 256  ;;  %p1999_p0 = scmp.lt.s32.totalorder %s581_s23, %s581_s23 }
  0x61   : > { %p1995_p13 = scmp.ne.s32.totalorder %s581_s23, %s1994_s2  ;;  %p2000_p1 = scmp.lt.s32.totalorder %s1994_s2, %s1994_s2 }
  0x63   : > { %p2001_p5 = por %p2000_p1, %p1999_p0 }
  0x65   : > { %p2002_p7 = pnand %p2001_p5, %p1995_p13 }
  0x67   : > { %2005 = shalt.err (!%p2002_p7)  }
  0x68   : > { %583 = dma.hbm_to_vmem [thread:$0]  %s2514_s24, 256, %s581_s23, [#allocation3] }
  0x69   : > { %2044 = dma.done.wait [#allocation3], 256 }
  0x6a   : > { %2045 = vsyncadd [#allocation3], 4294967040  ;;  %vm591_vm0 = vcmask 261120   ;;  %v587_v0 = vld [vmem:[#allocation2] sm:$0xff]  ;;  %v588_v1 = vld [vmem:[#allocation2 + $0x8] sm:$0xff] }
  0x6b   : > { %v592_v2 = vsel %vm591_vm0, %v587_v0, 0.0  ;;  %v595_v3 = vsel %vm591_vm0, %v588_v1, 0.0  ;;  %v1672_v21 = vld [vmem:[#allocation4] ss:$0 sm:$0xff]  ;;  %v1673_v23 = vld [vmem:[#allocation7] ss:$0 sm:$0xff] }
  0x6c   : > { %593 = vadd.xlane.f32.xlu0 %v592_v2 }
  0x70   : > { %596 = vadd.xlane.f32.xlu0 %v595_v3 }
  0xf9   : > { %v594_v4 = vpop.xlane.xlu0 %593 }
  0xfa   : > { %v599_v5 = vmul.f32 0.03125, %v594_v4 }
  0xfc   : > { %v601_v6 = vsub.f32 %v587_v0, %v599_v5 }
  0xfd   : > { %v597_v7 = vpop.xlane.xlu0 %596 }
  0xfe   : > { %v600_v8 = vmul.f32 0.03125, %v597_v7  ;;  %v603_v9 = vmul.f32 %v601_v6, %v601_v6 }
 0x100   : > { %v602_v10 = vsub.f32 %v588_v1, %v600_v8  ;;  %v605_v11 = vsel %vm591_vm0, %v603_v9, 0.0 }
 0x101   : > { %606 = vadd.xlane.f32.xlu1 %v605_v11 }
 0x102   : > { %v604_v12 = vmul.f32 %v602_v10, %v602_v10 }
 0x104   : > { %v608_v13 = vsel %vm591_vm0, %v604_v12, 0.0 }
 0x105   : > { %609 = vadd.xlane.f32.xlu1 %v608_v13 }
 0x18e   : > { %v607_v14 = vpop.xlane.xlu1 %606 }
 0x18f   : > { %v611_v15 = vmul.f32 0.03125, %v607_v14 }
 0x191   : > { %v613_v16 = vadd.f32 1e-12, %v611_v15 }
 0x192   : > { %v610_v17 = vpop.xlane.xlu1 %609 }
 0x193   : > { %1881 = vrsqrt.f32 %v613_v16  ;;  %v612_v18 = vmul.f32 0.03125, %v610_v17 }
 0x195   : > { %v614_v19 = vadd.f32 1e-12, %v612_v18 }
 0x197   : > { %1883 = vrsqrt.f32 %v614_v19 }
 0x19d   : > { %v1882_v20 = vpop.eup %1881 }
 0x19e   : > { %v617_v22 = vmul.f32 %v1882_v20, %v601_v6 }
 0x1a0   : > { %v625_v24 = vmul.f32 %v1672_v21, %v617_v22 }
 0x1a1   : > { %v1884_v25 = vpop.eup %1883 }
 0x1a2   : > { %v633_v26 = vadd.f32 %v1673_v23, %v625_v24  ;;  %v618_v27 = vmul.f32 %v1884_v25, %v602_v10 }
 0x1a4   : > { %635 = vst.msk [vmem:[#allocation2] sm:$0xff] %vm591_vm0, %v633_v26  ;;  %v626_v28 = vmul.f32 %v1672_v21, %v618_v27 }
 0x1a6   : > { %v634_v29 = vadd.f32 %v1673_v23, %v626_v28 }
 0x1a8   : > { %636 = vst.msk [vmem:[#allocation2 + $0x8] sm:$0xff] %vm591_vm0, %v634_v29 }
 0x1a9 PF: > { %v1890_v30 = vld [vmem:[%s2242_s19] sm:$0xff]   ;;  %v2057_v31 = vmov 0.0   ;;  %v1891_v32 = vld [vmem:[%s2242_s19 + $0x8] sm:$0xff]   ;;  %vm2058_vm1 = vmmov 0   ;;  %vm664_vm2 = vcmask 261120   ;;  %s644_s21 = scalar_lea.vmem %s2483_s8, %s2159_s22  ;;  %s2059_s19 = smov 96  }
 0x1aa   : > { %1750 = vmatprep.subr.bf16.mxu0 %v2057_v31  ;;  %1758 = vmatprep.subr.bf16.mxu1 %v2057_v31  ;;  %v1674_v36 = vld [vmem:[%s644_s21] ss:$0 sm:$0xff]  ;;  %vm719_vm3 = vcmask 130048   ;;  %vm830_vm4 = vcmask 64512   ;;  %v2329_v57 = vld [vmem:[%s2476_s1 + $0x1] ss:$0 sm:$0xff]  ;;  %s1191_s4 = scalar_lea.vmem %s2484_s9, %s2159_s22  ;;  %s1259_s28 = scalar_lea.vmem %s2486_s11, %s2159_s22 }
 0x1ab   : > { %1751 = vmatpush3.bf16.msra.mxu0 %v1890_v30  ;;  %1754 = vmatprep.mubr.msk.bf16.mxu0 %vm2058_vm1, %v2057_v31  ;;  %v2285_v33 = vld [vmem:[#allocation2] sm:$0xff]  ;;  %s2060_s20 = smov 64   ;;  %s2061_s27 = smov 80   ;;  %vm860_vm5 = vcmask 1043456   ;;  %vm1432_vm6 = vcmask 523264  }
 0x1ac   : > { %1752 = vmatprep.subr.bf16.mxu0 %v2057_v31  ;;  %1760 = vmatprep.mubr.msk.bf16.mxu1 %vm2058_vm1, %v2057_v31  ;;  %v2323_v50 = vld [vmem:[%s2476_s1] ss:$0 sm:$0xff]  ;;  %s2062_s25 = smov 112   ;;  %s2063_s2 = smov 48  }
 0x1ad   : > { %s2064_s17 = smov 16   ;;  %s1481_s5 = scalar_lea.vmem %s2490_s15, %s2159_s22 }
 0x1ae   : > { %p1708_p8 = scmp.ne.s32.totalorder %s2159_s22, 1 }
 0x1af   : > { %v2287_v34 = vld [vmem:[#allocation2 + $0x8] sm:$0xff]  ;;  %1753 = vmatpush3.bf16.msra.mxu0 %v1891_v32 }
 0x1b0   : > { %v639_v35 = vpack.c.bf16 %v2287_v34, %v2285_v33  ;;  %1764 = vmatprep.subr.bf16.mxu0 %v2057_v31 }
 0x1b2   : > { %1755 = vmatmul.mubr.msk.bf16.vlgmr.msra.gmra.mrb[0].mxu0 %vm664_vm2, %v639_v35 }
 0x1b3   : > { %1766 = vmatprep.mubr.msk.bf16.mxu0 %vm2058_vm1, %v2057_v31 }
 0x285   : > { %v702_v37 = vpop.f32.mrb[0].mxu0 }
 0x286   : > { %v703_v38 = vadd.f32 %v1674_v36, %v702_v37  ;;  %v1756_v39 = vpop.f32.mrb[1].mxu0 }
 0x287   : > { %v705_v40 = vpop.f32.mrb[2].mxu0 }
 0x288   : > { %v2302_v41 = vpack.c.bf16 %v703_v38, %v703_v38  ;;  %v706_v42 = vadd.f32 %v1674_v36, %v705_v40  ;;  %v1757_v43 = vpop.f32.mrb[3].mxu0 }
 0x28a   : > { %717 = vrot.lane.b32.xlu0 %v2302_v41, %s2059_s19  ;;  %v2305_v44 = vpack.c.bf16 %v706_v42, %v706_v42 }
 0x28e   : > { %766 = vrot.lane.b32.xlu0 %v2305_v44, %s2059_s19  ;;  %s1257_s19 = scalar_lea.vmem %s2485_s10, %s2159_s22 }
 0x2fc   : > { %v718_v45 = vpop.permute.xlu0 %717 }
 0x2fd   : > { %v724_v46 = vsel %vm719_vm3, %v718_v45, 0 }
 0x2fe   : > { %1759 = vmatpush3.bf16.xpose.msra.mxu1 %v724_v46 }
 0x2ff   : > { %1770 = vmatprep.subr.bf16.mxu1 %v2057_v31 }
 0x300   : > { %v767_v47 = vpop.permute.xlu0 %766 }
 0x301   : > { %v772_v48 = vsel %vm719_vm3, %v767_v47, 0 }
 0x302   : > { %1765 = vmatpush3.bf16.xpose.msra.mxu0 %v772_v48 }
 0x303   : > { %1776 = vmatprep.subr.bf16.mxu0 %v2057_v31 }
 0x305   : > { %1761 = vmatmul.mubr.msk.bf16.vlgmr.msra.gmra.mrb[0].mxu1 %vm719_vm3, %v2302_v41 }
 0x306   : > { %1772 = vmatprep.mubr.msk.bf16.mxu1 %vm2058_vm1, %v2057_v31 }
 0x309   : > { %1767 = vmatmul.mubr.msk.bf16.vlgmr.msra.gmra.mrb[4].mxu0 %vm719_vm3, %v2305_v44 }
 0x30a   : > { %1778 = vmatprep.mubr.msk.bf16.mxu0 %vm2058_vm1, %v2057_v31 }
 0x3d8   : > { %v760_v49 = vpop.f32.mrb[0].mxu1 }
 0x3d9   : > { %v814_v51 = vmul.f32 0.25, %v760_v49  ;;  %v1762_v52 = vpop.f32.mrb[1].mxu1 }
 0x3da   : > { %v763_v53 = vpop.f32.mrb[2].mxu1 }
 0x3db   : > { %v1763_v54 = vpop.f32.mrb[3].mxu1  ;;  %v828_v55 = vadd.f32 %v2323_v50, %v814_v51 }
 0x3dc   : > { %v808_v56 = vpop.f32.mrb[4].mxu0 }
 0x3dd   : > { %v815_v58 = vmul.f32 0.25, %v808_v56  ;;  %v1768_v59 = vpop.f32.mrb[5].mxu0  ;;  %v831_v60 = vsel %vm830_vm4, %v828_v55, -inf }
 0x3de   : > { %832 = vmax.xlane.f32.xlu1 %v831_v60  ;;  %v811_v61 = vpop.f32.mrb[6].mxu0 }
 0x3df   : > { %v1769_v62 = vpop.f32.mrb[7].mxu0  ;;  %v829_v63 = vadd.f32 %v2329_v57, %v815_v58 }
 0x3e1   : > { %v834_v0 = vsel %vm830_vm4, %v829_v63, -inf }
 0x3e2   : > { %835 = vmax.xlane.f32.xlu1 %v834_v0 }
 0x3f3   : > { %855 = vrot.lane.b32.xlu1 %v2302_v41, %s2060_s20 }
 0x3f7   : > { %904 = vrot.lane.b32.xlu1 %v2305_v44, %s2060_s20  ;;  %s1309_s20 = scalar_lea.vmem %s2487_s12, %s2159_s22 }
 0x3fb   : > { %954 = vrot.lane.b32.xlu1 %v2302_v41, %s2061_s27 }
 0x46b   : > { %v833_v1 = vpop.xlane.xlu1 %832 }
 0x46c   : > { %v837_v2 = vsub.f32 %v828_v55, %v833_v1 }
 0x46e   : > { %v839_v3 = vmul.f32 1.442695, %v837_v2 }
 0x46f   : > { %v836_v4 = vpop.xlane.xlu1 %835 }
 0x470   : > { %1900 = vpow2.f32 %v839_v3  ;;  %v838_v5 = vsub.f32 %v829_v63, %v836_v4 }
 0x472   : > { %v841_v6 = vmul.f32 1.442695, %v838_v5 }
 0x473   : > { %v856_v7 = vpop.permute.xlu1 %855 }
 0x474   : > { %1902 = vpow2.f32 %v841_v6  ;;  %v862_v8 = vsel %vm860_vm5, %v856_v7, 0 }
 0x475   : > { %1771 = vmatpush3.bf16.msra.mxu1 %v862_v8 }
 0x476   : > { %1782 = vmatprep.subr.bf16.mxu1 %v2057_v31 }
 0x477   : > { %v905_v9 = vpop.permute.xlu1 %904 }
 0x478   : > { %v910_v10 = vsel %vm860_vm5, %v905_v9, 0 }
 0x479   : > { %1777 = vmatpush3.bf16.msra.mxu0 %v910_v10 }
 0x47a   : > { %v1901_v11 = vpop.eup %1900  ;;  %1788 = vmatprep.subr.bf16.mxu0 %v2057_v31 }
 0x47b   : > { %v843_v12 = vsel %vm830_vm4, %v1901_v11, 0.0  ;;  %v955_v15 = vpop.permute.xlu1 %954 }
 0x47c   : > { %844 = vadd.xlane.f32.xlu0 %v843_v12  ;;  %v960_v22 = vsel %vm719_vm3, %v955_v15, 0  ;;  %v1892_v12 = vld [vmem:[%s2247_s26] sm:$0xff]  }
 0x47e   : > { %v1903_v13 = vpop.eup %1902 }
 0x47f   : > { %v846_v14 = vsel %vm830_vm4, %v1903_v13, 0.0 }
 0x480   : > { %847 = vadd.xlane.f32.xlu1 %v846_v14 }
 0x491   : > { %1004 = vrot.lane.b32.xlu1 %v2305_v44, %s2061_s27 }
 0x492   : > { %952 = vrot.lane.b32.xlu0 %v2302_v41, %s2062_s25 }
 0x495   : > { %1002 = vrot.lane.b32.xlu1 %v2305_v44, %s2062_s25  ;;  %s1400_s25 = scalar_lea.vmem %s2488_s13, %s2159_s22 }
 0x509   : > { %v845_v16 = vpop.xlane.xlu0 %844 }
 0x50a   : > { %1904 = vrcp.f32 %v845_v16 }
 0x50d   : > { %v848_v17 = vpop.xlane.xlu1 %847  ;;  %v953_v27 = vpop.permute.xlu0 %952 }
 0x50e   : > { %1906 = vrcp.f32 %v848_v17 }
 0x511   : > { %v1005_v24 = vpop.permute.xlu1 %1004 }
 0x512   : > { %v1010_v26 = vsel %vm719_vm3, %v1005_v24, 0 }
 0x514   : > { %v1905_v18 = vpop.eup %1904 }
 0x515   : > { %v851_v19 = vmul.f32 %v1905_v18, %v1901_v11  ;;  %v1003_v28 = vpop.permute.xlu1 %1002 }
 0x517   : > { %v853_v20 = vpack.c.bf16 %v851_v19, %v851_v19 }
 0x518   : > { %v1907_v21 = vpop.eup %1906 }
 0x519   : > { %v852_v23 = vmul.f32 %v1907_v21, %v1903_v13  ;;  %1773 = vmatmul.mubr.msk.bf16.vlgmr.msra.gmra.mrb[4].mxu1 %vm830_vm4, %v853_v20  ;;  %v1893_v13 = vld [vmem:[%s2247_s26 + $0x8] sm:$0xff]   ;;  %s1479_s26 = scalar_lea.vmem %s2489_s14, %s2159_s22 }
 0x51a   : > { %1783 = vmatpush3.bf16.xpose.msra.mxu1 %v960_v22  ;;  %1784 = vmatprep.mubr.msk.bf16.mxu1 %vm2058_vm1, %v2057_v31 }
 0x51b   : > { %v854_v25 = vpack.c.bf16 %v852_v23, %v852_v23  ;;  %1794 = vmatprep.subr.bf16.mxu1 %v2057_v31 }
 0x51d   : > { %1779 = vmatmul.mubr.msk.bf16.vlgmr.msra.gmra.mrb[8].mxu0 %vm830_vm4, %v854_v25 }
 0x51e   : > { %1789 = vmatpush3.bf16.xpose.msra.mxu0 %v1010_v26  ;;  %1790 = vmatprep.mubr.msk.bf16.mxu0 %vm2058_vm1, %v2057_v31 }
 0x51f   : > { %1800 = vmatprep.subr.bf16.mxu0 %v2057_v31 }
 0x521   : > { %1785 = vmatmul.mubr.msk.bf16.vlgmr.msra.gmra.mrb[8].mxu1 %vm719_vm3, %v953_v27 }
 0x522   : > { %1796 = vmatprep.mubr.msk.bf16.mxu1 %vm2058_vm1, %v2057_v31 }
 0x525   : > { %1791 = vmatmul.mubr.msk.bf16.vlgmr.msra.gmra.mrb[12].mxu0 %vm719_vm3, %v1003_v28 }
 0x526   : > { %1802 = vmatprep.mubr.msk.bf16.mxu0 %vm2058_vm1, %v2057_v31 }
 0x5ec   : > { %v2362_v29 = vpop.f32.mrb[4].mxu1 }
 0x5ed   : > { %v1774_v30 = vpop.f32.mrb[5].mxu1 }
 0x5ee   : > { %v901_v32 = vpop.f32.mrb[6].mxu1  ;;  %v1690_v30 = vld [vmem:[%s1191_s4] ss:$0 sm:$0xff] }
 0x5ef   : > { %v1775_v35 = vpop.f32.mrb[7].mxu1 }
 0x5f0   : > { %v2364_v36 = vpop.f32.mrb[8].mxu0 }
 0x5f1   : > { %v1780_v37 = vpop.f32.mrb[9].mxu0 }
 0x5f2   : > { %v949_v38 = vpop.f32.mrb[10].mxu0 }
 0x5f3   : > { %v1781_v39 = vpop.f32.mrb[11].mxu0 }
 0x5f4   : > { %v996_v40 = vpop.f32.mrb[8].mxu1 }
 0x5f5   : > { %v1052_v42 = vmul.f32 0.25, %v996_v40  ;;  %v1786_v43 = vpop.f32.mrb[9].mxu1 }
 0x5f6   : > { %v999_v45 = vpop.f32.mrb[10].mxu1 }
 0x5f7   : > { %v1787_v46 = vpop.f32.mrb[11].mxu1  ;;  %v1054_v47 = vadd.f32 %v2323_v50, %v1052_v42 }
 0x5f8   : > { %v1046_v48 = vpop.f32.mrb[12].mxu0 }
 0x5f9   : > { %v1053_v49 = vmul.f32 0.25, %v1046_v48  ;;  %v1792_v51 = vpop.f32.mrb[13].mxu0  ;;  %v1056_v52 = vsel %vm830_vm4, %v1054_v47, -inf }
 0x5fa   : > { %1057 = vmax.xlane.f32.xlu1 %v1056_v52  ;;  %v1049_v53 = vpop.f32.mrb[14].mxu0 }
 0x5fb   : > { %v1793_v54 = vpop.f32.mrb[15].mxu0  ;;  %v1055_v55 = vadd.f32 %v2329_v57, %v1053_v49 }
 0x5fc   : > { %v1894_v54 = vld [vmem:[%s2252_s30] sm:$0xff]  }
 0x5fd   : > { %v1059_v56 = vsel %vm830_vm4, %v1055_v55, -inf }
 0x5fe   : > { %1060 = vmax.xlane.f32.xlu0 %v1059_v56 }
 0x614   : > { %1128 = vrot.lane.b32.xlu0 %v2305_v44, %s2063_s2 }
 0x687   : > { %v1058_v58 = vpop.xlane.xlu1 %1057 }
 0x688   : > { %v1062_v59 = vsub.f32 %v1054_v47, %v1058_v58 }
 0x68a   : > { %v1064_v60 = vmul.f32 1.442695, %v1062_v59 }
 0x68b   : > { %v1061_v50 = vpop.xlane.xlu0 %1060 }
 0x68c   : > { %1908 = vpow2.f32 %v1064_v60  ;;  %v1063_v61 = vsub.f32 %v1055_v55, %v1061_v50  ;;  %v1895_v55 = vld [vmem:[%s2252_s30 + $0x8] sm:$0xff]  }
 0x68e   : > { %v1066_v62 = vmul.f32 1.442695, %v1063_v61 }
 0x68f   : > { %v1129_v63 = vpop.permute.xlu0 %1128 }
 0x690   : > { %1910 = vpow2.f32 %v1066_v62  ;;  %v1134_v0 = vsel %vm860_vm5, %v1129_v63, 0  ;;  %v1694_v63 = vld [vmem:[%s1257_s19] ss:$0 sm:$0xff] }
 0x691   : > { %1801 = vmatpush3.bf16.msra.mxu0 %v1134_v0 }
 0x692   : > { %1814 = vmatprep.subr.bf16.mxu0 %v2057_v31 }
 0x696   : > { %v1909_v57 = vpop.eup %1908 }
 0x697   : > { %v1068_v1 = vsel %vm830_vm4, %v1909_v57, 0.0 }
 0x698   : > { %1069 = vadd.xlane.f32.xlu1 %v1068_v1 }
 0x69a   : > { %v1911_v2 = vpop.eup %1910 }
 0x69b   : > { %v1071_v44 = vsel %vm830_vm4, %v1911_v2, 0.0 }
 0x69c   : > { %1072 = vadd.xlane.f32.xlu1 %v1071_v44  ;;  %v1695_v44 = vld [vmem:[%s1259_s28] ss:$0 sm:$0xff] }
 0x6ad   : > { %1080 = vrot.lane.b32.xlu1 %v2302_v41, %s2063_s2 }
 0x725   : > { %v1070_v3 = vpop.xlane.xlu1 %1069 }
 0x726   : > { %1912 = vrcp.f32 %v1070_v3 }
 0x729   : > { %v1073_v4 = vpop.xlane.xlu1 %1072 }
 0x72a   : > { %1914 = vrcp.f32 %v1073_v4 }
 0x72d   : > { %v1081_v5 = vpop.permute.xlu1 %1080 }
 0x72e   : > { %v1086_v6 = vsel %vm860_vm5, %v1081_v5, 0 }
 0x72f   : > { %1795 = vmatpush3.bf16.msra.mxu1 %v1086_v6 }
 0x730   : > { %v1913_v7 = vpop.eup %1912  ;;  %1806 = vmatprep.subr.bf16.mxu1 %v2057_v31 }
 0x731   : > { %v1076_v8 = vmul.f32 %v1913_v7, %v1909_v57  ;;  %v1896_v7 = vld [vmem:[%s2257_s3] sm:$0xff]  }
 0x733   : > { %v1078_v9 = vpack.c.bf16 %v1076_v8, %v1076_v8  ;;  %v1897_v8 = vld [vmem:[%s2257_s3 + $0x8] sm:$0xff]  }
 0x734   : > { %v1915_v10 = vpop.eup %1914 }
 0x735   : > { %v1077_v11 = vmul.f32 %v1915_v10, %v1911_v2  ;;  %1797 = vmatmul.mubr.msk.bf16.vlgmr.msra.gmra.mrb[12].mxu1 %vm830_vm4, %v1078_v9  ;;  %v1898_v9 = vld [vmem:[%s2257_s3 + $0x10] sm:$0xff]   ;;  %v1899_v10 = vld [vmem:[%s2257_s3 + $0x18] sm:$0xff]  }
 0x736   : > { %1810 = vmatprep.mubr.msk.bf16.mxu1 %vm2058_vm1, %v2057_v31  ;;  %1807 = vmatpush3.bf16.msra.mxu1 %v1892_v12 }
 0x737   : > { %v1079_v41 = vpack.c.bf16 %v1077_v11, %v1077_v11  ;;  %1808 = vmatprep.subr.bf16.mxu1 %v2057_v31  ;;  %v1696_v11 = vld [vmem:[%s1309_s20] ss:$0 sm:$0xff] }
 0x739   : > { %1803 = vmatmul.mubr.msk.bf16.vlgmr.msra.gmra.mrb[16].mxu0 %vm830_vm4, %v1079_v41 }
 0x73a   : > { %1818 = vmatprep.mubr.msk.bf16.mxu0 %vm2058_vm1, %v2057_v31  ;;  %1809 = vmatpush3.bf16.msra.mxu1 %v1893_v13 }
 0x73b   : > { %1822 = vmatprep.subr.bf16.mxu1 %v2057_v31  ;;  %1815 = vmatpush3.bf16.msra.mxu0 %v1894_v54 }
 0x73c   : > { %1816 = vmatprep.subr.bf16.mxu0 %v2057_v31 }
 0x73f   : > { %1817 = vmatpush3.bf16.msra.mxu0 %v1895_v55 }
 0x808   : > { %v1122_v14 = vpop.f32.mrb[12].mxu1 }
 0x809   : > { %v1798_v15 = vpop.f32.mrb[13].mxu1 }
 0x80a   : > { %v1125_v16 = vpop.f32.mrb[14].mxu1 }
 0x80b   : > { %v1799_v17 = vpop.f32.mrb[15].mxu1 }
 0x80c   : > { %v1170_v18 = vpop.f32.mrb[16].mxu0 }
 0x80d   : > { %v1885_v19 = vpack.i.bf16 %v1170_v18, %v1122_v14  ;;  %v1804_v20 = vpop.f32.mrb[17].mxu0 }
 0x80e   : > { %v1173_v21 = vpop.f32.mrb[18].mxu0 }
 0x80f   : > { %1886 = vrot.lane.b32.xlu1 %v1885_v19, %s2064_s17  ;;  %v1805_v22 = vpop.f32.mrb[19].mxu0 }
 0x881   : > { %v1887_v23 = vpop.permute.xlu1 %1886 }
 0x882   : > { %v1889_v24 = vunpack.i.h.bf16 %v1887_v23  ;;  %v1888_v25 = vunpack.i.l.bf16 %v1887_v23 }
 0x884   : > { %v1185_v26 = vsel %vm719_vm3, %v2364_v36, %v1889_v24  ;;  %v1184_v27 = vsel %vm719_vm3, %v2362_v29, %v1888_v25 }
 0x885   : > { %v1186_v28 = vpack.c.bf16 %v1185_v26, %v1184_v27 }
 0x887   : > { %1811 = vmatmul.mubr.msk.bf16.vlgmr.msra.gmra.mrb[16].mxu1 %vm664_vm2, %v1186_v28 }
 0x888   : > { %1830 = vmatprep.mubr.msk.bf16.mxu1 %vm2058_vm1, %v2057_v31  ;;  %1823 = vmatpush3.bf16.msra.mxu1 %v1896_v7 }
 0x889   : > { %1824 = vmatprep.subr.bf16.mxu1 %v2057_v31 }
 0x88c   : > { %1825 = vmatpush3.bf16.msra.mxu1 %v1897_v8 }
 0x88d   : > { %1826 = vmatprep.subr.bf16.mxu1 %v2057_v31 }
 0x890   : > { %1827 = vmatpush3.bf16.msra.mxu1 %v1898_v9 }
 0x891   : > { %1828 = vmatprep.subr.bf16.mxu1 %v2057_v31 }
 0x894   : > { %1829 = vmatpush3.bf16.msra.mxu1 %v1899_v10 }
 0x95a   : > { %v1248_v32 = vpop.f32.mrb[16].mxu1 }
 0x95b   : > { %v1249_v35 = vadd.f32 %v1690_v30, %v1248_v32  ;;  %v1812_v37 = vpop.f32.mrb[17].mxu1 }
 0x95c   : > { %v1251_v38 = vpop.f32.mrb[18].mxu1 }
 0x95d   : > { %v1252_v39 = vadd.f32 %v1690_v30, %v1251_v38  ;;  %v1813_v36 = vpop.f32.mrb[19].mxu1  ;;  %v1255_v40 = vadd.f32 %v1249_v35, %v2285_v33 }
 0x95e   : > { %v1700_v36 = vld [vmem:[%s1400_s25] ss:$0 sm:$0xff] }
 0x95f   : > { %v1261_v29 = vsel %vm664_vm2, %v1255_v40, 0.0  ;;  %v1256_v42 = vadd.f32 %v1252_v39, %v2287_v34 }
 0x960   : > { %1262 = vadd.xlane.f32.xlu1 %v1261_v29 }
 0x961   : > { %v1264_v43 = vsel %vm664_vm2, %v1256_v42, 0.0 }
 0x962   : > { %1265 = vadd.xlane.f32.xlu0 %v1264_v43 }
 0x9ed   : > { %v1263_v45 = vpop.xlane.xlu1 %1262 }
 0x9ee   : > { %v1268_v46 = vmul.f32 0.03125, %v1263_v45 }
 0x9ef   : > { %v1266_v47 = vpop.xlane.xlu0 %1265 }
 0x9f0   : > { %v1270_v48 = vsub.f32 %v1255_v40, %v1268_v46  ;;  %v1269_v49 = vmul.f32 0.03125, %v1266_v47 }
 0x9f2   : > { %v1271_v51 = vsub.f32 %v1256_v42, %v1269_v49  ;;  %v1272_v52 = vmul.f32 %v1270_v48, %v1270_v48 }
 0x9f4   : > { %v1274_v53 = vsel %vm664_vm2, %v1272_v52, 0.0  ;;  %v1273_v33 = vmul.f32 %v1271_v51, %v1271_v51 }
 0x9f5   : > { %1275 = vadd.xlane.f32.xlu0 %v1274_v53 }
 0x9f6   : > { %v1277_v34 = vsel %vm664_vm2, %v1273_v33, 0.0 }
 0x9f7   : > { %1278 = vadd.xlane.f32.xlu1 %v1277_v34 }
 0xa82   : > { %v1276_v56 = vpop.xlane.xlu0 %1275 }
 0xa83   : > { %v1280_v58 = vmul.f32 0.03125, %v1276_v56 }
 0xa84   : > { %v1279_v59 = vpop.xlane.xlu1 %1278 }
 0xa85   : > { %v1282_v60 = vadd.f32 1e-12, %v1280_v58  ;;  %v1281_v50 = vmul.f32 0.03125, %v1279_v59 }
 0xa87   : > { %1916 = vrsqrt.f32 %v1282_v60  ;;  %v1283_v61 = vadd.f32 1e-12, %v1281_v50 }
 0xa89   : > { %1918 = vrsqrt.f32 %v1283_v61 }
 0xa91   : > { %v1917_v62 = vpop.eup %1916 }
 0xa92   : > { %v1286_v0 = vmul.f32 %v1917_v62, %v1270_v48 }
 0xa93   : > { %v1919_v57 = vpop.eup %1918 }
 0xa94   : > { %v1294_v1 = vmul.f32 %v1694_v63, %v1286_v0  ;;  %v1287_v2 = vmul.f32 %v1919_v57, %v1271_v51 }
 0xa96   : > { %v1295_v3 = vmul.f32 %v1694_v63, %v1287_v2  ;;  %v1302_v4 = vadd.f32 %v1695_v44, %v1294_v1  ;;  %v1706_v2 = vld [vmem:[%s1479_s26] ss:$0 sm:$0xff] }
 0xa98   : > { %v1303_v5 = vadd.f32 %v1695_v44, %v1295_v3 }
 0xa9a   : > { %v1304_v6 = vpack.c.bf16 %v1303_v5, %v1302_v4 }
 0xa9c   : > { %1819 = vmatmul.mubr.msk.bf16.vlgmr.msra.gmra.mrb[20].mxu0 %vm664_vm2, %v1304_v6 }
 0xb6f   : > { %v1366_v41 = vpop.f32.mrb[20].mxu0 }
 0xb70   : > { %v1367_v12 = vadd.f32 %v1696_v11, %v1366_v41  ;;  %v1820_v13 = vpop.f32.mrb[21].mxu0 }
 0xb71   : > { %v1369_v14 = vpop.f32.mrb[22].mxu0 }
 0xb72   : > { %v1375_v15 = vmul.f32 0.044715, %v1367_v12  ;;  %v1370_v16 = vadd.f32 %v1696_v11, %v1369_v14  ;;  %v1821_v17 = vpop.f32.mrb[23].mxu0  ;;  %v1373_v30 = vmul.f32 0.5, %v1367_v12 }
 0xb74   : > { %v1377_v18 = vmul.f32 %v1375_v15, %v1367_v12  ;;  %v1376_v19 = vmul.f32 0.044715, %v1370_v16  ;;  %v1374_v32 = vmul.f32 0.5, %v1370_v16 }
 0xb76   : > { %v1379_v20 = vmul.f32 %v1377_v18, %v1367_v12  ;;  %v1378_v21 = vmul.f32 %v1376_v19, %v1370_v16 }
 0xb78   : > { %v1381_v22 = vadd.f32 %v1379_v20, %v1367_v12  ;;  %v1380_v23 = vmul.f32 %v1378_v21, %v1370_v16 }
 0xb7a   : > { %v1383_v31 = vmul.f32 0.7978846, %v1381_v22  ;;  %v1382_v24 = vadd.f32 %v1380_v23, %v1370_v16 }
 0xb7c   : > { %1920 = vtanh.f32 %v1383_v31  ;;  %v1384_v25 = vmul.f32 0.7978846, %v1382_v24 }
 0xb7e   : > { %1922 = vtanh.f32 %v1384_v25 }
 0xb86   : > { %v1921_v26 = vpop.eup %1920 }
 0xb87   : > { %v1387_v27 = vadd.f32 1.0, %v1921_v26 }
 0xb88   : > { %v1923_v28 = vpop.eup %1922 }
 0xb89   : > { %v1388_v35 = vadd.f32 1.0, %v1923_v28  ;;  %v1389_v37 = vmul.f32 %v1387_v27, %v1373_v30 }
 0xb8b   : > { %v1390_v38 = vmul.f32 %v1388_v35, %v1374_v32 }
 0xb8d   : > { %v1391_v39 = vpack.c.bf16 %v1390_v38, %v1389_v37 }
 0xb8f   : > { %1831 = vmatmul.mubr.msk.bf16.vlgmr.msra.gmra.mrb[20].mxu1 %vm1432_vm6, %v1391_v39 }
 0xc62   : > { %v1470_v40 = vpop.f32.mrb[20].mxu1 }
 0xc63   : > { %v1471_v29 = vadd.f32 %v1700_v36, %v1470_v40  ;;  %v1832_v42 = vpop.f32.mrb[21].mxu1 }
 0xc64   : > { %v1473_v43 = vpop.f32.mrb[22].mxu1 }
 0xc65   : > { %v1474_v45 = vadd.f32 %v1700_v36, %v1473_v43  ;;  %v1833_v46 = vpop.f32.mrb[23].mxu1  ;;  %v1477_v47 = vadd.f32 %v1471_v29, %v1302_v4  ;;  %v1707_v4 = vld [vmem:[%s1481_s5] ss:$0 sm:$0xff] }
 0xc67   : > { %v1483_v48 = vsel %vm664_vm2, %v1477_v47, 0.0  ;;  %v1478_v49 = vadd.f32 %v1474_v45, %v1303_v5 }
 0xc68   : > { %1484 = vadd.xlane.f32.xlu0 %v1483_v48 }
 0xc69   : > { %v1486_v51 = vsel %vm664_vm2, %v1478_v49, 0.0 }
 0xc6a   : > { %1487 = vadd.xlane.f32.xlu1 %v1486_v51 }
 0xcf5   : > { %v1485_v52 = vpop.xlane.xlu0 %1484 }
 0xcf6   : > { %v1489_v53 = vmul.f32 0.03125, %v1485_v52 }
 0xcf7   : > { %v1488_v33 = vpop.xlane.xlu1 %1487 }
 0xcf8   : > { %v1491_v34 = vsub.f32 %v1477_v47, %v1489_v53  ;;  %v1490_v54 = vmul.f32 0.03125, %v1488_v33 }
 0xcfa   : > { %v1492_v55 = vsub.f32 %v1478_v49, %v1490_v54  ;;  %v1493_v56 = vmul.f32 %v1491_v34, %v1491_v34 }
 0xcfc   : > { %v1495_v58 = vsel %vm664_vm2, %v1493_v56, 0.0  ;;  %v1494_v59 = vmul.f32 %v1492_v55, %v1492_v55 }
 0xcfd   : > { %1496 = vadd.xlane.f32.xlu0 %v1495_v58 }
 0xcfe   : > { %v1498_v60 = vsel %vm664_vm2, %v1494_v59, 0.0 }
 0xcff   : > { %1499 = vadd.xlane.f32.xlu1 %v1498_v60 }
 0xd8a   : > { %v1497_v50 = vpop.xlane.xlu0 %1496 }
 0xd8b   : > { %v1501_v61 = vmul.f32 0.03125, %v1497_v50 }
 0xd8c   : > { %v1500_v62 = vpop.xlane.xlu1 %1499 }
 0xd8d   : > { %v1503_v63 = vadd.f32 1e-12, %v1501_v61  ;;  %v1502_v0 = vmul.f32 0.03125, %v1500_v62 }
 0xd8f   : > { %1924 = vrsqrt.f32 %v1503_v63  ;;  %v1504_v57 = vadd.f32 1e-12, %v1502_v0 }
 0xd91   : > { %1926 = vrsqrt.f32 %v1504_v57 }
 0xd99   : > { %v1925_v1 = vpop.eup %1924 }
 0xd9a   : > { %v1507_v44 = vmul.f32 %v1925_v1, %v1491_v34 }
 0xd9b   : > { %v1927_v3 = vpop.eup %1926 }
 0xd9c   : > { %v1515_v5 = vmul.f32 %v1706_v2, %v1507_v44  ;;  %v1508_v6 = vmul.f32 %v1927_v3, %v1492_v55  ;;  %1530 = sbr.rel (%p1708_p8) target bundleno = 3499 (0xdab), region = 100 }
 0xd9e   : > { %v1523_v7 = vadd.f32 %v1707_v4, %v1515_v5  ;;  %v1516_v8 = vmul.f32 %v1706_v2, %v1508_v6 }
 0xda0   : > { %1525 = vst.msk [vmem:[#allocation2] sm:$0xff] %vm664_vm2, %v1523_v7  ;;  %v1524_v9 = vadd.f32 %v1707_v4, %v1516_v8 }
 0xda2   : > { %1526 = vst.msk [vmem:[#allocation2 + $0x8] sm:$0xff] %vm664_vm2, %v1524_v9 }
 0xda7   : > { %v1531_v10 = vld [vmem:[#allocation2] sm:$0xff] }
 0xda8   : > { %1533 = vst.msk [vmem:[#allocation9] sm:$0xff] %vm664_vm2, %v1531_v10 }
 0xda9   : > { %v1532_v11 = vld [vmem:[#allocation2 + $0x8] sm:$0xff] }
 0xdaa   : > { %1534 = vst.msk [vmem:[#allocation9 + $0x8] sm:$0xff] %vm664_vm2, %v1532_v11 }
 0xdab PF: > { %p1857_p2 = scmp.eq.s32.totalorder %s2159_s22, 1  ;;  %s2065_s21 = smov [#allocation9]  }
 0xdac   : > { %s1541_s19 = sshll.u32 %s2065_s21, 4  ;;  %s1542_s19 = int_to_ptr.vmem [resolvable:$true] %s1541_s19 }
 0xdad   : > { %s2006_s30 = scalar_lea.vmem %s1542_s19, 256  ;;  %p2013_p6 = scmp.lt.s32.totalorder %s1542_s19, %s1542_s19 }
 0xdae   : > { %p2007_p3 = scmp.ne.s32.totalorder %s1542_s19, %s2006_s30  ;;  %p2014_p10 = scmp.lt.s32.totalorder %s2006_s30, %s2006_s30 }
 0xdb0   : > { %p2008_p4 = pnand %p2007_p3, %p1857_p2  ;;  %p2015_p11 = por %p2014_p10, %p2013_p6 }
 0xdb2   : > { %p2009_p9 = pneg %p2008_p4 }
 0xdb4   : > { %p2016_p12 = pnand %p2015_p11, %p2009_p9 }
 0xdb6   : > { %2019 = shalt.err (!%p2016_p12)
}
 0xdb7   : > { %s2020_s23 = scalar_lea.hbm %s2491_s16, 256 }
 0xdb8   : > { %p2021_p13 = scmp.ne.s32.totalorder %s2491_s16, %s2020_s23  ;;  %p2026_p5 = scmp.lt.u32.totalorder %s2020_s23, %s2491_s16 }
 0xdba   : > { %p2022_p0 = pnand %p2021_p13, %p1857_p2 }
 0xdbc   : > { %p2023_p1 = pneg %p2022_p0 }
 0xdbe   : > { %p2028_p7 = pnand %p2026_p5, %p2023_p1 }
 0xdc0   : > { %2031 = shalt.err (!%p2028_p7)
}
 0xdc1   : > { %s2066_s25 = smov 128   ;;  %s2067_s2 = smov 8  }
 0xdc2   : > { %1843 = dma.vmem_to_hbm [thread:$0]  (%p1857_p2), %s1542_s19, 256, %s2491_s16, [#allocation6], %s2066_s25, %s2066_s25, %s2067_s2  }
 0xdc3   : > { %2047 = dma.done.wait (%p1857_p2), [#allocation6], 256  }
 0xdc4   : > { %2049 = vsyncadd (%p1857_p2), [#allocation6], 4294967040 }
 0xdc5 PF: > { %s2515_s29 = sld [smem:[#allocation18_spill]] }
 0xdcb   : > { %s29_s21 = sadd.s32 1, %s2515_s29  }
 0xdcc   : > { %p26_p8 = scmp.ge.s32.totalorder %s29_s21, 4  }
 0xdce   :  { %28 = sbr.rel (!%p26_p8) target bundleno = 9 (0x9), region = 145 }
 0xdd5   :  { %1557 = vsyncpa [#allocation5], 1 }
 0xdd6   :  { %1559 = vsyncpa [#allocation5 + $0x1], 1 }
 0xdd7   :  { %1560 = vsyncpa [#allocation8], 1 }
 0xdd8   :  { %1561 = vsyncpa [#allocation6], 1 }
 0xdd9   :  { %1563 = vsyncpa [#allocation6 + $0x1], 1 }
 0xdda   :  { %1564 = vsyncmov [#allocation3] }
 0xddd   :  { %s1565_s4 = vpop.sfrf %1564 }
 0xdde   :  { %p1713_p3 = scmp.ne.s32.totalorder %s1565_s4, 0 }
 0xde0   :  { %1569 = shalt.err (%p1713_p3)  }

</bundles_post_ra>
